<compile_context>
chip_gen: v7x
topology: tpu7x:2x2x1
jax: 0.10.0
libtpu: 0.0.40
codegen_flags: <defaults>
</compile_context>

<pallas_src>
import functools

import jax
import jax.numpy as jnp
from jax import lax
from jax.experimental import pallas as pl
from jax.experimental.pallas import tpu as pltpu


LK_TILE = 512          # max key-chunk length held as f32 logits at once
LANE = 128             # vreg lane width
SUBLANE_BF16 = 16      # bf16 packed sublane tile


def _attention_kernel(x_ref, m_ref,
                      wq_ref, bq_ref,
                      wkv_ref, bkv_ref,
                      wo_ref, bo_ref,
                      o_ref,
                      q_scr, mx_scr, l_scr, acc_scr,
                      *, lk_valid, lk_total):
    bt, lq_p, d_p = x_ref.shape
    _, ck, _ = m_ref.shape
    kc = pl.program_id(1)
    n_kc = pl.num_programs(1)

    # ---- per batch tile: Q projection (one flattened MXU pass) + state init -
    @pl.when(kc == 0)
    def _():
        x2 = x_ref[...].astype(jnp.bfloat16).reshape(bt * lq_p, d_p)
        q = jnp.dot(x2, wq_ref[...], preferred_element_type=jnp.float32)
        q = q + bq_ref[...]
        q_scr[...] = q.astype(jnp.bfloat16).reshape(bt, lq_p, d_p)
        mx_scr[...] = jnp.full(mx_scr.shape, -jnp.inf, mx_scr.dtype)
        l_scr[...] = jnp.zeros(l_scr.shape, l_scr.dtype)
        acc_scr[...] = jnp.zeros(acc_scr.shape, acc_scr.dtype)

    # ---- K/V projection for this key chunk (fused (D,2D) weight) ------------
    m2 = m_ref[...].astype(jnp.bfloat16).reshape(bt * ck, d_p)
    kv = jnp.dot(m2, wkv_ref[...], preferred_element_type=jnp.float32)
    kv = kv + bkv_ref[...]
    k3 = kv[:, :d_p].astype(jnp.bfloat16).reshape(bt, ck, d_p)
    v3 = kv[:, d_p:].astype(jnp.bfloat16).reshape(bt, ck, d_p)

    # ---- chunk logits = q @ k^T (contract on features, no transpose) --------
    s = jnp.einsum("bqd,bkd->bqk", q_scr[...], k3,
                   preferred_element_type=jnp.float32)       # (bt, lq_p, ck) f32

    # Mask key positions introduced by sequence padding: tiny (1,1,ck) additive
    # bias (zero for fully-valid chunks). Compile-time skip when no padding.
    if lk_total > lk_valid:
        col = lax.broadcasted_iota(jnp.int32, (1, 1, ck), 2) + kc * ck
        bias = jnp.where(col < lk_valid, jnp.float32(0.0), jnp.float32(-1e30))
        s = s + bias

    # ---- online softmax update (f32) -----------------------------------------
    m_prev = mx_scr[...]
    m_new = jnp.maximum(m_prev, jnp.max(s, axis=-1, keepdims=True))
    alpha = jnp.exp(m_prev - m_new)
    p = jnp.exp(s - m_new)
    l_scr[...] = alpha * l_scr[...] + jnp.sum(p, axis=-1, keepdims=True)
    acc_scr[...] = alpha * acc_scr[...] + jnp.einsum(
        "bqk,bkd->bqd", p.astype(jnp.bfloat16), v3,
        preferred_element_type=jnp.float32)
    mx_scr[...] = m_new

    # ---- finalize: normalize + output projection + store ---------------------
    @pl.when(kc == n_kc - 1)
    def _():
        # Approx reciprocal runs on the EUP slot; rows sum to 1 within ~1e-3.
        ctx = acc_scr[...] * pl.reciprocal(l_scr[...], approx=True)
        ctx2 = ctx.astype(jnp.bfloat16).reshape(bt * lq_p, d_p)
        y = jnp.dot(ctx2, wo_ref[...], preferred_element_type=jnp.float32)
        y = (y + bo_ref[...]).reshape(bt, lq_p, d_p)
        lq_out = o_ref.shape[1]           # trims Lq padding at the store if any
        o_ref[...] = y[:, :lq_out, :].astype(o_ref.dtype)


def _round_up(n, m):
    return ((n + m - 1) // m) * m


def _pad_to(a, axis, target):
    if a.shape[axis] == target:
        return a
    widths = [(0, 0)] * a.ndim
    widths[axis] = (0, target - a.shape[axis])
    return jnp.pad(a, widths)


def _vmem_capacity_bytes():
    try:
        cap = getattr(pltpu.get_tpu_info(), "vmem_capacity_bytes", None)
        if cap:
            return int(cap)
    except Exception:
        pass
    return 64 * 1024 * 1024     # conservative: v7x per-TensorCore VMEM


def _vmem_estimate(bt, lq_p, lk_chunk, d_p, out_rows,
                   x_bytes, m_bytes, out_bytes, w_buffers):
    """Rough upper bound on per-step VMEM: pipeline buffers + weights +
    scratch + in-kernel f32/bf16 intermediates."""
    blocks = 2 * bt * lq_p * d_p * x_bytes             # x block (double-buffered)
    blocks += 2 * bt * lk_chunk * d_p * m_bytes        # memory chunk
    blocks += 2 * bt * out_rows * d_p * out_bytes      # output block
    weights = w_buffers * (4 * d_p * d_p * 2 + 4 * d_p * 4)    # bf16 W's + f32 biases
    scratch = bt * lq_p * d_p * (2 + 4) + 2 * bt * lq_p * 4    # q bf16, acc f32, m/l
    interm = (bt * lk_chunk * 2 * d_p * 4              # kv projection f32
              + 2 * bt * lk_chunk * d_p * 2            # k/v bf16
              + 2 * bt * lq_p * lk_chunk * 4           # logits + probs f32
              + 2 * bt * lq_p * d_p * 4)               # q/out projection f32 temps
    return blocks + weights + scratch + interm


def _pick_batch_tile(B, lq_p, n_kc, fits):
    """Largest batch tile that (a) fits the VMEM budget and (b) keeps enough
    grid steps for pipeline depth / megacore, preferring MXU-friendly
    bt*lq_p multiples of 256."""
    divisors = [d for d in range(1, B + 1) if B % d == 0]
    feasible = [d for d in divisors if fits(d)]
    if not feasible:
        return 1
    target_steps = min(4, B * n_kc)
    deep = [d for d in feasible if (B // d) * n_kc >= target_steps]
    pool = deep if deep else [min(feasible)]
    preferred = [d for d in pool if (d * lq_p) % 256 == 0]
    return max(preferred) if preferred else max(pool)


@functools.partial(jax.jit, static_argnames=("single_buffer_weights",))
def _simple_attention_impl(x, memory, params, *, single_buffer_weights):
    B, Lq, D = x.shape
    _, Lk, _ = memory.shape
    out_dtype = x.dtype

    # Padded (lane-dense / bf16-sublane-aligned) geometry.
    D_p = _round_up(D, LANE)
    Lq_p = _round_up(Lq, SUBLANE_BF16)
    Lk_p = _round_up(Lk, SUBLANE_BF16)
    if Lk_p > LK_TILE:
        lk_chunk = LK_TILE
        Lk_p = _round_up(Lk_p, LK_TILE)
    else:
        lk_chunk = Lk_p
    n_kc = Lk_p // lk_chunk

    # Activations: skip the extra HBM pass when already aligned (the kernel
    # casts to bf16 itself); otherwise pad+cast fuse into one pass under jit.
    if (Lq, D) == (Lq_p, D_p):
        xp = x
    else:
        xp = _pad_to(_pad_to(x, 2, D_p), 1, Lq_p).astype(jnp.bfloat16)
    if (Lk, D) == (Lk_p, D_p):
        mp = memory
    else:
        mp = _pad_to(_pad_to(memory, 2, D_p), 1, Lk_p).astype(jnp.bfloat16)

    # Weights: torch (out,in) -> (in,out), zero-padded to D_p; K/V fused.
    def pad_w(w):
        return _pad_to(_pad_to(w.T, 0, D_p), 1, D_p)

    def pad_b(b):
        return _pad_to(b.reshape(1, -1), 1, D_p)

    wq = pad_w(params["wq"]).astype(jnp.bfloat16)
    wo = pad_w(params["wo"]).astype(jnp.bfloat16)
    wkv = jnp.concatenate([pad_w(params["wk"]), pad_w(params["wv"])],
                          axis=1).astype(jnp.bfloat16)
    bq = pad_b(params["bq"]).astype(jnp.float32)
    bo = pad_b(params["bo"]).astype(jnp.float32)
    bkv = jnp.concatenate([pad_b(params["bk"]), pad_b(params["bv"])],
                          axis=1).astype(jnp.float32)

    # Trim Lq padding in-kernel when D is already lane-aligned (store stays
    # lane-dense, no post-kernel HBM round trip).
    out_rows = Lq if D_p == D else Lq_p

    # VMEM-budget-driven batch tile + explicit vmem limit.
    x_bytes = jnp.dtype(xp.dtype).itemsize
    m_bytes = jnp.dtype(mp.dtype).itemsize
    o_bytes = jnp.dtype(out_dtype).itemsize
    w_buffers = 1 if single_buffer_weights else 2
    vmem_cap = _vmem_capacity_bytes()
    budget = min(vmem_cap, 64 * 1024 * 1024) // 2

    def fits(bt):
        return _vmem_estimate(bt, Lq_p, lk_chunk, D_p, out_rows,
                              x_bytes, m_bytes, o_bytes, w_buffers) <= budget

    bt = _pick_batch_tile(B, Lq_p, n_kc, fits)
    grid = (B // bt, n_kc)
    est = _vmem_estimate(bt, Lq_p, lk_chunk, D_p, out_rows,
                         x_bytes, m_bytes, o_bytes, w_buffers)
    vmem_limit = int(min(int(vmem_cap * 0.9),
                         max(int(est * 1.5), 32 * 1024 * 1024)))

    def wspec(shape):
        # Grid-invariant operands: fetched once; single-buffer to save VMEM.
        if single_buffer_weights:
            return pl.BlockSpec(shape, lambda b, k: (0, 0),
                                pipeline_mode=pl.Buffered(1))
        return pl.BlockSpec(shape, lambda b, k: (0, 0))

    kernel = functools.partial(_attention_kernel, lk_valid=Lk, lk_total=Lk_p)

    out = pl.pallas_call(
        kernel,
        out_shape=jax.ShapeDtypeStruct((B, out_rows, D_p), out_dtype),
        grid_spec=pltpu.PrefetchScalarGridSpec(
            num_scalar_prefetch=0,
            grid=grid,
            in_specs=[
                pl.BlockSpec((bt, Lq_p, D_p), lambda b, k: (b, 0, 0)),      # x
                pl.BlockSpec((bt, lk_chunk, D_p), lambda b, k: (b, k, 0)),  # memory
                wspec((D_p, D_p)),          # Wq^T
                wspec((1, D_p)),            # bq
                wspec((D_p, 2 * D_p)),      # [Wk^T | Wv^T]
                wspec((1, 2 * D_p)),        # [bk | bv]
                wspec((D_p, D_p)),          # Wo^T
                wspec((1, D_p)),            # bo
            ],
            out_specs=pl.BlockSpec((bt, out_rows, D_p), lambda b, k: (b, 0, 0)),
            scratch_shapes=[
                pltpu.VMEM((bt, Lq_p, D_p), jnp.bfloat16),   # projected Q
                pltpu.VMEM((bt, Lq_p, 1), jnp.float32),      # running max
                pltpu.VMEM((bt, Lq_p, 1), jnp.float32),      # running denom
                pltpu.VMEM((bt, Lq_p, D_p), jnp.float32),    # context accumulator
            ],
        ),
        compiler_params=pltpu.CompilerParams(
            dimension_semantics=("parallel", "arbitrary"),
            vmem_limit_bytes=vmem_limit),
    )(xp, mp, wq, bq, wkv, bkv, wo, bo)

    if D_p != D:
        out = out[:, :Lq, :D]   # only when the feature dim was padded
    return out


def simple_attention(x, memory, attension_mask, params):
    """x: (B, Lq, D), memory: (B, Lk, D).  attension_mask is received but
    unused, exactly like the PyTorch reference forward."""
    del attension_mask  # received but never used by the reference forward
    try:
        out = _simple_attention_impl(x, memory, params,
                                     single_buffer_weights=True)
        return jax.block_until_ready(out)
    except Exception:
        # Fallback for jax versions where pipeline_mode=pl.Buffered(1) is not
        # supported by the default pallas_call pipeline.
        return _simple_attention_impl(x, memory, params,
                                      single_buffer_weights=False)


def init_params(key, dim):
    """Deterministic init mimicking nn.Linear's uniform(-1/sqrt(dim), 1/sqrt(dim))."""
    bound = 1.0 / (dim ** 0.5)
    keys = jax.random.split(key, 8)
    u = lambda k, shape: jax.random.uniform(k, shape, jnp.float32, -bound, bound)
    return {
        "wq": u(keys[0], (dim, dim)), "bq": u(keys[1], (dim,)),
        "wk": u(keys[2], (dim, dim)), "bk": u(keys[3], (dim,)),
        "wv": u(keys[4], (dim, dim)), "bv": u(keys[5], (dim,)),
        "wo": u(keys[6], (dim, dim)), "bo": u(keys[7], (dim,)),
    }


def _reference(x, memory, params):
    """Pure-JAX f32 reference of the PyTorch forward, for a sanity check."""
    q = x @ params["wq"].T + params["bq"]
    k = memory @ params["wk"].T + params["bk"]
    v = memory @ params["wv"].T + params["bv"]
    logit = jnp.einsum("bqd,bkd->bqk", q, k)
    attn = jax.nn.softmax(logit, axis=2)
    out = jnp.einsum("bqk,bkd->bqd", attn, v)
    return out @ params["wo"].T + params["bo"]


if __name__ == "__main__":
    key = jax.random.PRNGKey(0)
    k_x, k_m, k_p = jax.random.split(key, 3)

    B, Lq, Lk, dim = 2, 8, 8, 32
    x = jax.random.normal(k_x, (B, Lq, dim), jnp.float32)
    memory = jax.random.normal(k_m, (B, Lk, dim), jnp.float32)
    attension_mask = jnp.ones((B, Lq, Lk), jnp.float32)  # received, unused (as in PyTorch)
    params = init_params(k_p, dim)

    out = simple_attention(x, memory, attension_mask, params)
    out = jax.block_until_ready(out)

    ref = _reference(x, memory, params)
    assert out.shape == (B, Lq, dim)
    # bf16 MXU operands (f32 accumulation) + approx softmax denom -> compare
    # against the f32 reference with a correspondingly loosened tolerance.
    assert jnp.allclose(out, ref, atol=5e-2, rtol=5e-2), \
        float(jnp.max(jnp.abs(out - ref)))

    print("KERNEL_OK")
</pallas_src>

<mosaic_0001>
module attributes {stable_mosaic.version = 11 : i64} {
  func.func @_attention_kernel(%arg0: i32, %arg1: i32, %arg2: memref<1x16x128xbf16, #tpu.memory_space<vmem>>, %arg3: memref<1x16x128xbf16, #tpu.memory_space<vmem>>, %arg4: memref<128x128xbf16, #tpu.memory_space<vmem>>, %arg5: memref<1x128xf32, #tpu.memory_space<vmem>>, %arg6: memref<128x256xbf16, #tpu.memory_space<vmem>>, %arg7: memref<1x256xf32, #tpu.memory_space<vmem>>, %arg8: memref<128x128xbf16, #tpu.memory_space<vmem>>, %arg9: memref<1x128xf32, #tpu.memory_space<vmem>>, %arg10: memref<1x16x128xf32, #tpu.memory_space<vmem>>, %arg11: memref<1x16x128xbf16, #tpu.memory_space<vmem>>, %arg12: memref<1x16x1xf32, #tpu.memory_space<vmem>>, %arg13: memref<1x16x1xf32, #tpu.memory_space<vmem>>, %arg14: memref<1x16x128xf32, #tpu.memory_space<vmem>>) attributes {dimension_semantics = [#tpu.dimension_semantics<parallel>, #tpu.dimension_semantics<arbitrary>], iteration_bounds = array<i64: 2, 1>, scalar_prefetch = 0 : i64, scratch_operands = 4 : i64, tpu.core_type = #tpu.core_type<tc>, window_params = [{transform_indices = @transform_0, window_bounds = array<i64: 1, 16, 128>}, {transform_indices = @transform_1, window_bounds = array<i64: 1, 16, 128>}, {pipeline_mode = #tpu.pipeline_mode<synchronous>, transform_indices = @transform_2, window_bounds = array<i64: 128, 128>}, {pipeline_mode = #tpu.pipeline_mode<synchronous>, transform_indices = @transform_3, window_bounds = array<i64: 1, 128>}, {pipeline_mode = #tpu.pipeline_mode<synchronous>, transform_indices = @transform_4, window_bounds = array<i64: 128, 256>}, {pipeline_mode = #tpu.pipeline_mode<synchronous>, transform_indices = @transform_5, window_bounds = array<i64: 1, 256>}, {pipeline_mode = #tpu.pipeline_mode<synchronous>, transform_indices = @transform_6, window_bounds = array<i64: 128, 128>}, {pipeline_mode = #tpu.pipeline_mode<synchronous>, transform_indices = @transform_7, window_bounds = array<i64: 1, 128>}, {transform_indices = @transform_8, window_bounds = array<i64: 1, 16, 128>}]} {
    %c0_i32 = arith.constant 0 : i32
    %0 = arith.cmpi eq, %arg1, %c0_i32 : i32
    %1 = arith.extui %0 : i1 to i32
    %c0_i32_0 = arith.constant 0 : i32
    %2 = arith.cmpi ne, %1, %c0_i32_0 : i32
    scf.if %2 {
      %c0_36 = arith.constant 0 : index
      %c0_37 = arith.constant 0 : index
      %c0_38 = arith.constant 0 : index
      %55 = vector.load %arg2[%c0_36, %c0_37, %c0_38] : memref<1x16x128xbf16, #tpu.memory_space<vmem>>, vector<1x16x128xbf16>
      %56 = vector.shape_cast %55 : vector<1x16x128xbf16> to vector<16x128xbf16>
      %c0_39 = arith.constant 0 : index
      %c0_40 = arith.constant 0 : index
      %57 = vector.load %arg4[%c0_39, %c0_40] : memref<128x128xbf16, #tpu.memory_space<vmem>>, vector<128x128xbf16>
      %cst_41 = arith.constant dense<0.000000e+00> : vector<16x128xf32>
      %58 = tpu.matmul %56, %57, %cst_41 {dimension_numbers = #tpu.dot_dimension_numbers<[1], [0], [0], [1], [0, 0, 1, 1], [], []>} : vector<16x128xbf16>, vector<128x128xbf16>, vector<16x128xf32> -> vector<16x128xf32>
      %c0_42 = arith.constant 0 : index
      %c0_43 = arith.constant 0 : index
      %59 = vector.load %arg5[%c0_42, %c0_43] : memref<1x128xf32, #tpu.memory_space<vmem>>, vector<1x128xf32>
      %60 = vector.broadcast %59 : vector<1x128xf32> to vector<16x128xf32>
      %61 = arith.addf %58, %60 : vector<16x128xf32>
      %62 = arith.truncf %61 : vector<16x128xf32> to vector<16x128xbf16>
      %63 = vector.shape_cast %62 : vector<16x128xbf16> to vector<1x16x128xbf16>
      %c0_44 = arith.constant 0 : index
      %c0_45 = arith.constant 0 : index
      %c0_46 = arith.constant 0 : index
      %64 = vector.load %arg11[%c0_44, %c0_45, %c0_46] : memref<1x16x128xbf16, #tpu.memory_space<vmem>>, vector<1x16x128xbf16>
      tpu.vector_store %arg11[%c0_44, %c0_45, %c0_46], %63 {strides = array<i32>} : memref<1x16x128xbf16, #tpu.memory_space<vmem>>, vector<1x16x128xbf16>,
      %cst_47 = arith.constant 0xFF800000 : f32
      %65 = vector.broadcast %cst_47 : f32 to vector<1x16x1xf32>
      %c0_48 = arith.constant 0 : index
      %c0_49 = arith.constant 0 : index
      %c0_50 = arith.constant 0 : index
      %66 = vector.load %arg12[%c0_48, %c0_49, %c0_50] : memref<1x16x1xf32, #tpu.memory_space<vmem>>, vector<1x16x1xf32>
      tpu.vector_store %arg12[%c0_48, %c0_49, %c0_50], %65 {strides = array<i32>} : memref<1x16x1xf32, #tpu.memory_space<vmem>>, vector<1x16x1xf32>,
      %cst_51 = arith.constant 0.000000e+00 : f32
      %67 = vector.broadcast %cst_51 : f32 to vector<1x16x1xf32>
      %c0_52 = arith.constant 0 : index
      %c0_53 = arith.constant 0 : index
      %c0_54 = arith.constant 0 : index
      %68 = vector.load %arg13[%c0_52, %c0_53, %c0_54] : memref<1x16x1xf32, #tpu.memory_space<vmem>>, vector<1x16x1xf32>
      tpu.vector_store %arg13[%c0_52, %c0_53, %c0_54], %67 {strides = array<i32>} : memref<1x16x1xf32, #tpu.memory_space<vmem>>, vector<1x16x1xf32>,
      %cst_55 = arith.constant 0.000000e+00 : f32
      %69 = vector.broadcast %cst_55 : f32 to vector<1x16x128xf32>
      %c0_56 = arith.constant 0 : index
      %c0_57 = arith.constant 0 : index
      %c0_58 = arith.constant 0 : index
      %70 = vector.load %arg14[%c0_56, %c0_57, %c0_58] : memref<1x16x128xf32, #tpu.memory_space<vmem>>, vector<1x16x128xf32>
      tpu.vector_store %arg14[%c0_56, %c0_57, %c0_58], %69 {strides = array<i32>} : memref<1x16x128xf32, #tpu.memory_space<vmem>>, vector<1x16x128xf32>,
    } else {
    }
    %c0 = arith.constant 0 : index
    %c0_1 = arith.constant 0 : index
    %c0_2 = arith.constant 0 : index
    %3 = vector.load %arg3[%c0, %c0_1, %c0_2] : memref<1x16x128xbf16, #tpu.memory_space<vmem>>, vector<1x16x128xbf16>
    %4 = vector.shape_cast %3 : vector<1x16x128xbf16> to vector<16x128xbf16>
    %c0_3 = arith.constant 0 : index
    %c0_4 = arith.constant 0 : index
    %5 = vector.load %arg6[%c0_3, %c0_4] : memref<128x256xbf16, #tpu.memory_space<vmem>>, vector<128x256xbf16>
    %cst = arith.constant dense<0.000000e+00> : vector<16x256xf32>
    %6 = tpu.matmul %4, %5, %cst {dimension_numbers = #tpu.dot_dimension_numbers<[1], [0], [0], [1], [0, 0, 1, 1], [], []>} : vector<16x128xbf16>, vector<128x256xbf16>, vector<16x256xf32> -> vector<16x256xf32>
    %c0_5 = arith.constant 0 : index
    %c0_6 = arith.constant 0 : index
    %7 = vector.load %arg7[%c0_5, %c0_6] : memref<1x256xf32, #tpu.memory_space<vmem>>, vector<1x256xf32>
    %8 = vector.broadcast %7 : vector<1x256xf32> to vector<16x256xf32>
    %9 = arith.addf %6, %8 : vector<16x256xf32>
    %10 = vector.extract_strided_slice %9 {offsets = [0, 0], sizes = [16, 128], strides = [1, 1]} : vector<16x256xf32> to vector<16x128xf32>
    %11 = arith.truncf %10 : vector<16x128xf32> to vector<16x128xbf16>
    %12 = vector.shape_cast %11 : vector<16x128xbf16> to vector<1x16x128xbf16>
    %13 = vector.extract_strided_slice %9 {offsets = [0, 128], sizes = [16, 128], strides = [1, 1]} : vector<16x256xf32> to vector<16x128xf32>
    %14 = arith.truncf %13 : vector<16x128xf32> to vector<16x128xbf16>
    %15 = vector.shape_cast %14 : vector<16x128xbf16> to vector<1x16x128xbf16>
    %c0_7 = arith.constant 0 : index
    %c0_8 = arith.constant 0 : index
    %c0_9 = arith.constant 0 : index
    %16 = vector.load %arg11[%c0_7, %c0_8, %c0_9] : memref<1x16x128xbf16, #tpu.memory_space<vmem>>, vector<1x16x128xbf16>
    "tpu.trace_start"() <{level = 10 : i32, message = "bqd,bkd->bqk"}> : () -> ()
    %cst_10 = arith.constant dense<0.000000e+00> : vector<1x16x16xf32>
    %17 = tpu.matmul %16, %12, %cst_10 {dimension_numbers = #tpu.dot_dimension_numbers<[2], [2], [1], [1], [0, 0, 0, 1, 1, 1], [0], [0]>} : vector<1x16x128xbf16>, vector<1x16x128xbf16>, vector<1x16x16xf32> -> vector<1x16x16xf32>
    "tpu.trace_stop"() : () -> ()
    %18 = tpu.iota {dimensions = array<i32: 2>} : vector<1x1x16xi32>
    %c16_i32 = arith.constant 16 : i32
    %19 = arith.muli %arg1, %c16_i32 : i32
    %20 = vector.broadcast %19 : i32 to vector<1x1x16xi32>
    %21 = arith.addi %18, %20 : vector<1x1x16xi32>
    %c8_i32 = arith.constant 8 : i32
    %22 = vector.broadcast %c8_i32 : i32 to vector<1x1x16xi32>
    %23 = arith.cmpi slt, %21, %22 : vector<1x1x16xi32>
    %cst_11 = arith.constant 0.000000e+00 : f32
    %cst_12 = arith.constant -1.000000e+30 : f32
    %24 = vector.broadcast %cst_11 : f32 to vector<1x1x16xf32>
    %25 = vector.broadcast %cst_12 : f32 to vector<1x1x16xf32>
    %26 = arith.select %23, %24, %25 : vector<1x1x16xi1>, vector<1x1x16xf32>
    %27 = vector.broadcast %26 : vector<1x1x16xf32> to vector<1x16x16xf32>
    %28 = arith.addf %17, %27 : vector<1x16x16xf32>
    %c0_13 = arith.constant 0 : index
    %c0_14 = arith.constant 0 : index
    %c0_15 = arith.constant 0 : index
    %29 = vector.load %arg12[%c0_13, %c0_14, %c0_15] : memref<1x16x1xf32, #tpu.memory_space<vmem>>, vector<1x16x1xf32>
    %cst_16 = arith.constant dense<0xFF800000> : vector<1x16xf32>
    %30 = vector.multi_reduction <maximumf>, %28, %cst_16 [2] : vector<1x16x16xf32> to vector<1x16xf32>
    %31 = vector.shape_cast %30 : vector<1x16xf32> to vector<1x16x1xf32>
    %32 = arith.maximumf %29, %31 : vector<1x16x1xf32>
    %33 = arith.subf %29, %32 : vector<1x16x1xf32>
    %34 = math.exp %33 : vector<1x16x1xf32>
    %35 = vector.broadcast %32 : vector<1x16x1xf32> to vector<1x16x16xf32>
    %36 = arith.subf %28, %35 : vector<1x16x16xf32>
    %37 = math.exp %36 : vector<1x16x16xf32>
    %c0_17 = arith.constant 0 : index
    %c0_18 = arith.constant 0 : index
    %c0_19 = arith.constant 0 : index
    %38 = vector.load %arg13[%c0_17, %c0_18, %c0_19] : memref<1x16x1xf32, #tpu.memory_space<vmem>>, vector<1x16x1xf32>
    %39 = arith.mulf %34, %38 : vector<1x16x1xf32>
    %cst_20 = arith.constant dense<0.000000e+00> : vector<1x16xf32>
    %40 = vector.multi_reduction <add>, %37, %cst_20 [2] : vector<1x16x16xf32> to vector<1x16xf32>
    %41 = vector.shape_cast %40 : vector<1x16xf32> to vector<1x16x1xf32>
    %42 = arith.addf %39, %41 : vector<1x16x1xf32>
    %c0_21 = arith.constant 0 : index
    %c0_22 = arith.constant 0 : index
    %c0_23 = arith.constant 0 : index
    %43 = vector.load %arg13[%c0_21, %c0_22, %c0_23] : memref<1x16x1xf32, #tpu.memory_space<vmem>>, vector<1x16x1xf32>
    tpu.vector_store %arg13[%c0_21, %c0_22, %c0_23], %42 {strides = array<i32>} : memref<1x16x1xf32, #tpu.memory_space<vmem>>, vector<1x16x1xf32>,
    %c0_24 = arith.constant 0 : index
    %c0_25 = arith.constant 0 : index
    %c0_26 = arith.constant 0 : index
    %44 = vector.load %arg14[%c0_24, %c0_25, %c0_26] : memref<1x16x128xf32, #tpu.memory_space<vmem>>, vector<1x16x128xf32>
    %45 = vector.broadcast %34 : vector<1x16x1xf32> to vector<1x16x128xf32>
    %46 = arith.mulf %45, %44 : vector<1x16x128xf32>
    %47 = arith.truncf %37 : vector<1x16x16xf32> to vector<1x16x16xbf16>
    "tpu.trace_start"() <{level = 10 : i32, message = "bqk,bkd->bqd"}> : () -> ()
    %cst_27 = arith.constant dense<0.000000e+00> : vector<1x16x128xf32>
    %48 = tpu.matmul %47, %15, %cst_27 {dimension_numbers = #tpu.dot_dimension_numbers<[2], [1], [1], [2], [0, 0, 0, 1, 1, 2], [0], [0]>} : vector<1x16x16xbf16>, vector<1x16x128xbf16>, vector<1x16x128xf32> -> vector<1x16x128xf32>
    "tpu.trace_stop"() : () -> ()
    %49 = arith.addf %46, %48 : vector<1x16x128xf32>
    %c0_28 = arith.constant 0 : index
    %c0_29 = arith.constant 0 : index
    %c0_30 = arith.constant 0 : index
    %50 = vector.load %arg14[%c0_28, %c0_29, %c0_30] : memref<1x16x128xf32, #tpu.memory_space<vmem>>, vector<1x16x128xf32>
    tpu.vector_store %arg14[%c0_28, %c0_29, %c0_30], %49 {strides = array<i32>} : memref<1x16x128xf32, #tpu.memory_space<vmem>>, vector<1x16x128xf32>,
    %c0_31 = arith.constant 0 : index
    %c0_32 = arith.constant 0 : index
    %c0_33 = arith.constant 0 : index
    %51 = vector.load %arg12[%c0_31, %c0_32, %c0_33] : memref<1x16x1xf32, #tpu.memory_space<vmem>>, vector<1x16x1xf32>
    tpu.vector_store %arg12[%c0_31, %c0_32, %c0_33], %32 {strides = array<i32>} : memref<1x16x1xf32, #tpu.memory_space<vmem>>, vector<1x16x1xf32>,
    %c0_i32_34 = arith.constant 0 : i32
    %52 = arith.cmpi eq, %arg1, %c0_i32_34 : i32
    %53 = arith.extui %52 : i1 to i32
    %c0_i32_35 = arith.constant 0 : i32
    %54 = arith.cmpi ne, %53, %c0_i32_35 : i32
    scf.if %54 {
      %c0_36 = arith.constant 0 : index
      %c0_37 = arith.constant 0 : index
      %c0_38 = arith.constant 0 : index
      %55 = vector.load %arg14[%c0_36, %c0_37, %c0_38] : memref<1x16x128xf32, #tpu.memory_space<vmem>>, vector<1x16x128xf32>
      %c0_39 = arith.constant 0 : index
      %c0_40 = arith.constant 0 : index
      %c0_41 = arith.constant 0 : index
      %56 = vector.load %arg13[%c0_39, %c0_40, %c0_41] : memref<1x16x1xf32, #tpu.memory_space<vmem>>, vector<1x16x1xf32>
      %57 = tpu.reciprocal %56 {approx = true} : vector<1x16x1xf32> -> vector<1x16x1xf32>
      %58 = vector.broadcast %57 : vector<1x16x1xf32> to vector<1x16x128xf32>
      %59 = arith.mulf %55, %58 : vector<1x16x128xf32>
      %60 = arith.truncf %59 : vector<1x16x128xf32> to vector<1x16x128xbf16>
      %61 = vector.shape_cast %60 : vector<1x16x128xbf16> to vector<16x128xbf16>
      %c0_42 = arith.constant 0 : index
      %c0_43 = arith.constant 0 : index
      %62 = vector.load %arg8[%c0_42, %c0_43] : memref<128x128xbf16, #tpu.memory_space<vmem>>, vector<128x128xbf16>
      %cst_44 = arith.constant dense<0.000000e+00> : vector<16x128xf32>
      %63 = tpu.matmul %61, %62, %cst_44 {dimension_numbers = #tpu.dot_dimension_numbers<[1], [0], [0], [1], [0, 0, 1, 1], [], []>} : vector<16x128xbf16>, vector<128x128xbf16>, vector<16x128xf32> -> vector<16x128xf32>
      %c0_45 = arith.constant 0 : index
      %c0_46 = arith.constant 0 : index
      %64 = vector.load %arg9[%c0_45, %c0_46] : memref<1x128xf32, #tpu.memory_space<vmem>>, vector<1x128xf32>
      %65 = vector.broadcast %64 : vector<1x128xf32> to vector<16x128xf32>
      %66 = arith.addf %63, %65 : vector<16x128xf32>
      %67 = vector.shape_cast %66 : vector<16x128xf32> to vector<1x16x128xf32>
      %c0_47 = arith.constant 0 : index
      %c0_48 = arith.constant 0 : index
      %c0_49 = arith.constant 0 : index
      %68 = vector.load %arg10[%c0_47, %c0_48, %c0_49] : memref<1x16x128xf32, #tpu.memory_space<vmem>>, vector<1x16x128xf32>
      tpu.vector_store %arg10[%c0_47, %c0_48, %c0_49], %67 {strides = array<i32>} : memref<1x16x128xf32, #tpu.memory_space<vmem>>, vector<1x16x128xf32>,
    } else {
    }
    return
  }
  func.func @transform_0(%arg0: i32, %arg1: i32) -> (i32, i32, i32) {
    %c0_i32 = arith.constant 0 : i32
    %c0_i32_0 = arith.constant 0 : i32
    %c0_i32_1 = arith.constant 0 : i32
    return %arg0, %c0_i32, %c0_i32_0 : i32, i32, i32
  }
  func.func @transform_1(%arg0: i32, %arg1: i32) -> (i32, i32, i32) {
    %c0_i32 = arith.constant 0 : i32
    %c0_i32_0 = arith.constant 0 : i32
    return %arg0, %arg1, %c0_i32 : i32, i32, i32
  }
  func.func @transform_2(%arg0: i32, %arg1: i32) -> (i32, i32) {
    %c0_i32 = arith.constant 0 : i32
    %c0_i32_0 = arith.constant 0 : i32
    %c0_i32_1 = arith.constant 0 : i32
    return %c0_i32, %c0_i32_0 : i32, i32
  }
  func.func @transform_3(%arg0: i32, %arg1: i32) -> (i32, i32) {
    %c0_i32 = arith.constant 0 : i32
    %c0_i32_0 = arith.constant 0 : i32
    %c0_i32_1 = arith.constant 0 : i32
    return %c0_i32, %c0_i32_0 : i32, i32
  }
  func.func @transform_4(%arg0: i32, %arg1: i32) -> (i32, i32) {
    %c0_i32 = arith.constant 0 : i32
    %c0_i32_0 = arith.constant 0 : i32
    %c0_i32_1 = arith.constant 0 : i32
    return %c0_i32, %c0_i32_0 : i32, i32
  }
  func.func @transform_5(%arg0: i32, %arg1: i32) -> (i32, i32) {
    %c0_i32 = arith.constant 0 : i32
    %c0_i32_0 = arith.constant 0 : i32
    %c0_i32_1 = arith.constant 0 : i32
    return %c0_i32, %c0_i32_0 : i32, i32
  }
  func.func @transform_6(%arg0: i32, %arg1: i32) -> (i32, i32) {
    %c0_i32 = arith.constant 0 : i32
    %c0_i32_0 = arith.constant 0 : i32
    %c0_i32_1 = arith.constant 0 : i32
    return %c0_i32, %c0_i32_0 : i32, i32
  }
  func.func @transform_7(%arg0: i32, %arg1: i32) -> (i32, i32) {
    %c0_i32 = arith.constant 0 : i32
    %c0_i32_0 = arith.constant 0 : i32
    %c0_i32_1 = arith.constant 0 : i32
    return %c0_i32, %c0_i32_0 : i32, i32
  }
  func.func @transform_8(%arg0: i32, %arg1: i32) -> (i32, i32, i32) {
    %c0_i32 = arith.constant 0 : i32
    %c0_i32_0 = arith.constant 0 : i32
    %c0_i32_1 = arith.constant 0 : i32
    return %arg0, %c0_i32, %c0_i32_0 : i32, i32, i32
  }
}

module attributes {stable_mosaic.version = 11 : i64} {
  func.func @_attention_kernel(%arg0: i32, %arg1: i32, %arg2: memref<1x16x128xbf16, #tpu.memory_space<vmem>>, %arg3: memref<1x16x128xbf16, #tpu.memory_space<vmem>>, %arg4: memref<128x128xbf16, #tpu.memory_space<vmem>>, %arg5: memref<1x128xf32, #tpu.memory_space<vmem>>, %arg6: memref<128x256xbf16, #tpu.memory_space<vmem>>, %arg7: memref<1x256xf32, #tpu.memory_space<vmem>>, %arg8: memref<128x128xbf16, #tpu.memory_space<vmem>>, %arg9: memref<1x128xf32, #tpu.memory_space<vmem>>, %arg10: memref<1x16x128xf32, #tpu.memory_space<vmem>>, %arg11: memref<1x16x128xbf16, #tpu.memory_space<vmem>>, %arg12: memref<1x16x1xf32, #tpu.memory_space<vmem>>, %arg13: memref<1x16x1xf32, #tpu.memory_space<vmem>>, %arg14: memref<1x16x128xf32, #tpu.memory_space<vmem>>) attributes {dimension_semantics = [#tpu.dimension_semantics<parallel>, #tpu.dimension_semantics<arbitrary>], iteration_bounds = array<i64: 2, 1>, scalar_prefetch = 0 : i64, scratch_operands = 4 : i64, tpu.core_type = #tpu.core_type<tc>, window_params = [{transform_indices = @transform_0, window_bounds = array<i64: 1, 16, 128>}, {transform_indices = @transform_1, window_bounds = array<i64: 1, 16, 128>}, {pipeline_mode = #tpu.pipeline_mode<synchronous>, transform_indices = @transform_2, window_bounds = array<i64: 128, 128>}, {pipeline_mode = #tpu.pipeline_mode<synchronous>, transform_indices = @transform_3, window_bounds = array<i64: 1, 128>}, {pipeline_mode = #tpu.pipeline_mode<synchronous>, transform_indices = @transform_4, window_bounds = array<i64: 128, 256>}, {pipeline_mode = #tpu.pipeline_mode<synchronous>, transform_indices = @transform_5, window_bounds = array<i64: 1, 256>}, {pipeline_mode = #tpu.pipeline_mode<synchronous>, transform_indices = @transform_6, window_bounds = array<i64: 128, 128>}, {pipeline_mode = #tpu.pipeline_mode<synchronous>, transform_indices = @transform_7, window_bounds = array<i64: 1, 128>}, {transform_indices = @transform_8, window_bounds = array<i64: 1, 16, 128>}]} {
    %c0_i32 = arith.constant 0 : i32
    %0 = arith.cmpi eq, %arg1, %c0_i32 : i32
    %1 = arith.extui %0 : i1 to i32
    %c0_i32_0 = arith.constant 0 : i32
    %2 = arith.cmpi ne, %1, %c0_i32_0 : i32
    scf.if %2 {
      %c0_36 = arith.constant 0 : index
      %c0_37 = arith.constant 0 : index
      %c0_38 = arith.constant 0 : index
      %55 = vector.load %arg2[%c0_36, %c0_37, %c0_38] : memref<1x16x128xbf16, #tpu.memory_space<vmem>>, vector<1x16x128xbf16>
      %56 = vector.shape_cast %55 : vector<1x16x128xbf16> to vector<16x128xbf16>
      %c0_39 = arith.constant 0 : index
      %c0_40 = arith.constant 0 : index
      %57 = vector.load %arg4[%c0_39, %c0_40] : memref<128x128xbf16, #tpu.memory_space<vmem>>, vector<128x128xbf16>
      %cst_41 = arith.constant dense<0.000000e+00> : vector<16x128xf32>
      %58 = tpu.matmul %56, %57, %cst_41 {dimension_numbers = #tpu.dot_dimension_numbers<[1], [0], [0], [1], [0, 0, 1, 1], [], []>} : vector<16x128xbf16>, vector<128x128xbf16>, vector<16x128xf32> -> vector<16x128xf32>
      %c0_42 = arith.constant 0 : index
      %c0_43 = arith.constant 0 : index
      %59 = vector.load %arg5[%c0_42, %c0_43] : memref<1x128xf32, #tpu.memory_space<vmem>>, vector<1x128xf32>
      %60 = vector.broadcast %59 : vector<1x128xf32> to vector<16x128xf32>
      %61 = arith.addf %58, %60 : vector<16x128xf32>
      %62 = arith.truncf %61 : vector<16x128xf32> to vector<16x128xbf16>
      %63 = vector.shape_cast %62 : vector<16x128xbf16> to vector<1x16x128xbf16>
      %c0_44 = arith.constant 0 : index
      %c0_45 = arith.constant 0 : index
      %c0_46 = arith.constant 0 : index
      %64 = vector.load %arg11[%c0_44, %c0_45, %c0_46] : memref<1x16x128xbf16, #tpu.memory_space<vmem>>, vector<1x16x128xbf16>
      tpu.vector_store %arg11[%c0_44, %c0_45, %c0_46], %63 {strides = array<i32>} : memref<1x16x128xbf16, #tpu.memory_space<vmem>>, vector<1x16x128xbf16>,
      %cst_47 = arith.constant 0xFF800000 : f32
      %65 = vector.broadcast %cst_47 : f32 to vector<1x16x1xf32>
      %c0_48 = arith.constant 0 : index
      %c0_49 = arith.constant 0 : index
      %c0_50 = arith.constant 0 : index
      %66 = vector.load %arg12[%c0_48, %c0_49, %c0_50] : memref<1x16x1xf32, #tpu.memory_space<vmem>>, vector<1x16x1xf32>
      tpu.vector_store %arg12[%c0_48, %c0_49, %c0_50], %65 {strides = array<i32>} : memref<1x16x1xf32, #tpu.memory_space<vmem>>, vector<1x16x1xf32>,
      %cst_51 = arith.constant 0.000000e+00 : f32
      %67 = vector.broadcast %cst_51 : f32 to vector<1x16x1xf32>
      %c0_52 = arith.constant 0 : index
      %c0_53 = arith.constant 0 : index
      %c0_54 = arith.constant 0 : index
      %68 = vector.load %arg13[%c0_52, %c0_53, %c0_54] : memref<1x16x1xf32, #tpu.memory_space<vmem>>, vector<1x16x1xf32>
      tpu.vector_store %arg13[%c0_52, %c0_53, %c0_54], %67 {strides = array<i32>} : memref<1x16x1xf32, #tpu.memory_space<vmem>>, vector<1x16x1xf32>,
      %cst_55 = arith.constant 0.000000e+00 : f32
      %69 = vector.broadcast %cst_55 : f32 to vector<1x16x128xf32>
      %c0_56 = arith.constant 0 : index
      %c0_57 = arith.constant 0 : index
      %c0_58 = arith.constant 0 : index
      %70 = vector.load %arg14[%c0_56, %c0_57, %c0_58] : memref<1x16x128xf32, #tpu.memory_space<vmem>>, vector<1x16x128xf32>
      tpu.vector_store %arg14[%c0_56, %c0_57, %c0_58], %69 {strides = array<i32>} : memref<1x16x128xf32, #tpu.memory_space<vmem>>, vector<1x16x128xf32>,
    } else {
    }
    %c0 = arith.constant 0 : index
    %c0_1 = arith.constant 0 : index
    %c0_2 = arith.constant 0 : index
    %3 = vector.load %arg3[%c0, %c0_1, %c0_2] : memref<1x16x128xbf16, #tpu.memory_space<vmem>>, vector<1x16x128xbf16>
    %4 = vector.shape_cast %3 : vector<1x16x128xbf16> to vector<16x128xbf16>
    %c0_3 = arith.constant 0 : index
    %c0_4 = arith.constant 0 : index
    %5 = vector.load %arg6[%c0_3, %c0_4] : memref<128x256xbf16, #tpu.memory_space<vmem>>, vector<128x256xbf16>
    %cst = arith.constant dense<0.000000e+00> : vector<16x256xf32>
    %6 = tpu.matmul %4, %5, %cst {dimension_numbers = #tpu.dot_dimension_numbers<[1], [0], [0], [1], [0, 0, 1, 1], [], []>} : vector<16x128xbf16>, vector<128x256xbf16>, vector<16x256xf32> -> vector<16x256xf32>
    %c0_5 = arith.constant 0 : index
    %c0_6 = arith.constant 0 : index
    %7 = vector.load %arg7[%c0_5, %c0_6] : memref<1x256xf32, #tpu.memory_space<vmem>>, vector<1x256xf32>
    %8 = vector.broadcast %7 : vector<1x256xf32> to vector<16x256xf32>
    %9 = arith.addf %6, %8 : vector<16x256xf32>
    %10 = vector.extract_strided_slice %9 {offsets = [0, 0], sizes = [16, 128], strides = [1, 1]} : vector<16x256xf32> to vector<16x128xf32>
    %11 = arith.truncf %10 : vector<16x128xf32> to vector<16x128xbf16>
    %12 = vector.shape_cast %11 : vector<16x128xbf16> to vector<1x16x128xbf16>
    %13 = vector.extract_strided_slice %9 {offsets = [0, 128], sizes = [16, 128], strides = [1, 1]} : vector<16x256xf32> to vector<16x128xf32>
    %14 = arith.truncf %13 : vector<16x128xf32> to vector<16x128xbf16>
    %15 = vector.shape_cast %14 : vector<16x128xbf16> to vector<1x16x128xbf16>
    %c0_7 = arith.constant 0 : index
    %c0_8 = arith.constant 0 : index
    %c0_9 = arith.constant 0 : index
    %16 = vector.load %arg11[%c0_7, %c0_8, %c0_9] : memref<1x16x128xbf16, #tpu.memory_space<vmem>>, vector<1x16x128xbf16>
    "tpu.trace_start"() <{level = 10 : i32, message = "bqd,bkd->bqk"}> : () -> ()
    %cst_10 = arith.constant dense<0.000000e+00> : vector<1x16x16xf32>
    %17 = tpu.matmul %16, %12, %cst_10 {dimension_numbers = #tpu.dot_dimension_numbers<[2], [2], [1], [1], [0, 0, 0, 1, 1, 1], [0], [0]>} : vector<1x16x128xbf16>, vector<1x16x128xbf16>, vector<1x16x16xf32> -> vector<1x16x16xf32>
    "tpu.trace_stop"() : () -> ()
    %18 = tpu.iota {dimensions = array<i32: 2>} : vector<1x1x16xi32>
    %c16_i32 = arith.constant 16 : i32
    %19 = arith.muli %arg1, %c16_i32 : i32
    %20 = vector.broadcast %19 : i32 to vector<1x1x16xi32>
    %21 = arith.addi %18, %20 : vector<1x1x16xi32>
    %c8_i32 = arith.constant 8 : i32
    %22 = vector.broadcast %c8_i32 : i32 to vector<1x1x16xi32>
    %23 = arith.cmpi slt, %21, %22 : vector<1x1x16xi32>
    %cst_11 = arith.constant 0.000000e+00 : f32
    %cst_12 = arith.constant -1.000000e+30 : f32
    %24 = vector.broadcast %cst_11 : f32 to vector<1x1x16xf32>
    %25 = vector.broadcast %cst_12 : f32 to vector<1x1x16xf32>
    %26 = arith.select %23, %24, %25 : vector<1x1x16xi1>, vector<1x1x16xf32>
    %27 = vector.broadcast %26 : vector<1x1x16xf32> to vector<1x16x16xf32>
    %28 = arith.addf %17, %27 : vector<1x16x16xf32>
    %c0_13 = arith.constant 0 : index
    %c0_14 = arith.constant 0 : index
    %c0_15 = arith.constant 0 : index
    %29 = vector.load %arg12[%c0_13, %c0_14, %c0_15] : memref<1x16x1xf32, #tpu.memory_space<vmem>>, vector<1x16x1xf32>
    %cst_16 = arith.constant dense<0xFF800000> : vector<1x16xf32>
    %30 = vector.multi_reduction <maximumf>, %28, %cst_16 [2] : vector<1x16x16xf32> to vector<1x16xf32>
    %31 = vector.shape_cast %30 : vector<1x16xf32> to vector<1x16x1xf32>
    %32 = arith.maximumf %29, %31 : vector<1x16x1xf32>
    %33 = arith.subf %29, %32 : vector<1x16x1xf32>
    %34 = math.exp %33 : vector<1x16x1xf32>
    %35 = vector.broadcast %32 : vector<1x16x1xf32> to vector<1x16x16xf32>
    %36 = arith.subf %28, %35 : vector<1x16x16xf32>
    %37 = math.exp %36 : vector<1x16x16xf32>
    %c0_17 = arith.constant 0 : index
    %c0_18 = arith.constant 0 : index
    %c0_19 = arith.constant 0 : index
    %38 = vector.load %arg13[%c0_17, %c0_18, %c0_19] : memref<1x16x1xf32, #tpu.memory_space<vmem>>, vector<1x16x1xf32>
    %39 = arith.mulf %34, %38 : vector<1x16x1xf32>
    %cst_20 = arith.constant dense<0.000000e+00> : vector<1x16xf32>
    %40 = vector.multi_reduction <add>, %37, %cst_20 [2] : vector<1x16x16xf32> to vector<1x16xf32>
    %41 = vector.shape_cast %40 : vector<1x16xf32> to vector<1x16x1xf32>
    %42 = arith.addf %39, %41 : vector<1x16x1xf32>
    %c0_21 = arith.constant 0 : index
    %c0_22 = arith.constant 0 : index
    %c0_23 = arith.constant 0 : index
    %43 = vector.load %arg13[%c0_21, %c0_22, %c0_23] : memref<1x16x1xf32, #tpu.memory_space<vmem>>, vector<1x16x1xf32>
    tpu.vector_store %arg13[%c0_21, %c0_22, %c0_23], %42 {strides = array<i32>} : memref<1x16x1xf32, #tpu.memory_space<vmem>>, vector<1x16x1xf32>,
    %c0_24 = arith.constant 0 : index
    %c0_25 = arith.constant 0 : index
    %c0_26 = arith.constant 0 : index
    %44 = vector.load %arg14[%c0_24, %c0_25, %c0_26] : memref<1x16x128xf32, #tpu.memory_space<vmem>>, vector<1x16x128xf32>
    %45 = vector.broadcast %34 : vector<1x16x1xf32> to vector<1x16x128xf32>
    %46 = arith.mulf %45, %44 : vector<1x16x128xf32>
    %47 = arith.truncf %37 : vector<1x16x16xf32> to vector<1x16x16xbf16>
    "tpu.trace_start"() <{level = 10 : i32, message = "bqk,bkd->bqd"}> : () -> ()
    %cst_27 = arith.constant dense<0.000000e+00> : vector<1x16x128xf32>
    %48 = tpu.matmul %47, %15, %cst_27 {dimension_numbers = #tpu.dot_dimension_numbers<[2], [1], [1], [2], [0, 0, 0, 1, 1, 2], [0], [0]>} : vector<1x16x16xbf16>, vector<1x16x128xbf16>, vector<1x16x128xf32> -> vector<1x16x128xf32>
    "tpu.trace_stop"() : () -> ()
    %49 = arith.addf %46, %48 : vector<1x16x128xf32>
    %c0_28 = arith.constant 0 : index
    %c0_29 = arith.constant 0 : index
    %c0_30 = arith.constant 0 : index
    %50 = vector.load %arg14[%c0_28, %c0_29, %c0_30] : memref<1x16x128xf32, #tpu.memory_space<vmem>>, vector<1x16x128xf32>
    tpu.vector_store %arg14[%c0_28, %c0_29, %c0_30], %49 {strides = array<i32>} : memref<1x16x128xf32, #tpu.memory_space<vmem>>, vector<1x16x128xf32>,
    %c0_31 = arith.constant 0 : index
    %c0_32 = arith.constant 0 : index
    %c0_33 = arith.constant 0 : index
    %51 = vector.load %arg12[%c0_31, %c0_32, %c0_33] : memref<1x16x1xf32, #tpu.memory_space<vmem>>, vector<1x16x1xf32>
    tpu.vector_store %arg12[%c0_31, %c0_32, %c0_33], %32 {strides = array<i32>} : memref<1x16x1xf32, #tpu.memory_space<vmem>>, vector<1x16x1xf32>,
    %c0_i32_34 = arith.constant 0 : i32
    %52 = arith.cmpi eq, %arg1, %c0_i32_34 : i32
    %53 = arith.extui %52 : i1 to i32
    %c0_i32_35 = arith.constant 0 : i32
    %54 = arith.cmpi ne, %53, %c0_i32_35 : i32
    scf.if %54 {
      %c0_36 = arith.constant 0 : index
      %c0_37 = arith.constant 0 : index
      %c0_38 = arith.constant 0 : index
      %55 = vector.load %arg14[%c0_36, %c0_37, %c0_38] : memref<1x16x128xf32, #tpu.memory_space<vmem>>, vector<1x16x128xf32>
      %c0_39 = arith.constant 0 : index
      %c0_40 = arith.constant 0 : index
      %c0_41 = arith.constant 0 : index
      %56 = vector.load %arg13[%c0_39, %c0_40, %c0_41] : memref<1x16x1xf32, #tpu.memory_space<vmem>>, vector<1x16x1xf32>
      %57 = tpu.reciprocal %56 {approx = true} : vector<1x16x1xf32> -> vector<1x16x1xf32>
      %58 = vector.broadcast %57 : vector<1x16x1xf32> to vector<1x16x128xf32>
      %59 = arith.mulf %55, %58 : vector<1x16x128xf32>
      %60 = arith.truncf %59 : vector<1x16x128xf32> to vector<1x16x128xbf16>
      %61 = vector.shape_cast %60 : vector<1x16x128xbf16> to vector<16x128xbf16>
      %c0_42 = arith.constant 0 : index
      %c0_43 = arith.constant 0 : index
      %62 = vector.load %arg8[%c0_42, %c0_43] : memref<128x128xbf16, #tpu.memory_space<vmem>>, vector<128x128xbf16>
      %cst_44 = arith.constant dense<0.000000e+00> : vector<16x128xf32>
      %63 = tpu.matmul %61, %62, %cst_44 {dimension_numbers = #tpu.dot_dimension_numbers<[1], [0], [0], [1], [0, 0, 1, 1], [], []>} : vector<16x128xbf16>, vector<128x128xbf16>, vector<16x128xf32> -> vector<16x128xf32>
      %c0_45 = arith.constant 0 : index
      %c0_46 = arith.constant 0 : index
      %64 = vector.load %arg9[%c0_45, %c0_46] : memref<1x128xf32, #tpu.memory_space<vmem>>, vector<1x128xf32>
      %65 = vector.broadcast %64 : vector<1x128xf32> to vector<16x128xf32>
      %66 = arith.addf %63, %65 : vector<16x128xf32>
      %67 = vector.shape_cast %66 : vector<16x128xf32> to vector<1x16x128xf32>
      %c0_47 = arith.constant 0 : index
      %c0_48 = arith.constant 0 : index
      %c0_49 = arith.constant 0 : index
      %68 = vector.load %arg10[%c0_47, %c0_48, %c0_49] : memref<1x16x128xf32, #tpu.memory_space<vmem>>, vector<1x16x128xf32>
      tpu.vector_store %arg10[%c0_47, %c0_48, %c0_49], %67 {strides = array<i32>} : memref<1x16x128xf32, #tpu.memory_space<vmem>>, vector<1x16x128xf32>,
    } else {
    }
    return
  }
  func.func @transform_0(%arg0: i32, %arg1: i32) -> (i32, i32, i32) {
    %c0_i32 = arith.constant 0 : i32
    %c0_i32_0 = arith.constant 0 : i32
    %c0_i32_1 = arith.constant 0 : i32
    return %arg0, %c0_i32, %c0_i32_0 : i32, i32, i32
  }
  func.func @transform_1(%arg0: i32, %arg1: i32) -> (i32, i32, i32) {
    %c0_i32 = arith.constant 0 : i32
    %c0_i32_0 = arith.constant 0 : i32
    return %arg0, %arg1, %c0_i32 : i32, i32, i32
  }
  func.func @transform_2(%arg0: i32, %arg1: i32) -> (i32, i32) {
    %c0_i32 = arith.constant 0 : i32
    %c0_i32_0 = arith.constant 0 : i32
    %c0_i32_1 = arith.constant 0 : i32
    return %c0_i32, %c0_i32_0 : i32, i32
  }
  func.func @transform_3(%arg0: i32, %arg1: i32) -> (i32, i32) {
    %c0_i32 = arith.constant 0 : i32
    %c0_i32_0 = arith.constant 0 : i32
    %c0_i32_1 = arith.constant 0 : i32
    return %c0_i32, %c0_i32_0 : i32, i32
  }
  func.func @transform_4(%arg0: i32, %arg1: i32) -> (i32, i32) {
    %c0_i32 = arith.constant 0 : i32
    %c0_i32_0 = arith.constant 0 : i32
    %c0_i32_1 = arith.constant 0 : i32
    return %c0_i32, %c0_i32_0 : i32, i32
  }
  func.func @transform_5(%arg0: i32, %arg1: i32) -> (i32, i32) {
    %c0_i32 = arith.constant 0 : i32
    %c0_i32_0 = arith.constant 0 : i32
    %c0_i32_1 = arith.constant 0 : i32
    return %c0_i32, %c0_i32_0 : i32, i32
  }
  func.func @transform_6(%arg0: i32, %arg1: i32) -> (i32, i32) {
    %c0_i32 = arith.constant 0 : i32
    %c0_i32_0 = arith.constant 0 : i32
    %c0_i32_1 = arith.constant 0 : i32
    return %c0_i32, %c0_i32_0 : i32, i32
  }
  func.func @transform_7(%arg0: i32, %arg1: i32) -> (i32, i32) {
    %c0_i32 = arith.constant 0 : i32
    %c0_i32_0 = arith.constant 0 : i32
    %c0_i32_1 = arith.constant 0 : i32
    return %c0_i32, %c0_i32_0 : i32, i32
  }
  func.func @transform_8(%arg0: i32, %arg1: i32) -> (i32, i32, i32) {
    %c0_i32 = arith.constant 0 : i32
    %c0_i32_0 = arith.constant 0 : i32
    %c0_i32_1 = arith.constant 0 : i32
    return %arg0, %c0_i32, %c0_i32_0 : i32, i32, i32
  }
}

</mosaic_0001>

<bundles_post_ra>
// kernel: _simple_attention_impl.1
= control target key start
LH: loop header
LB: loop body
LE: loop exit
PB: predicated region body
PF: predicated region fallthrough
CT: control target
= control target key end

     0   :  { %s1314_s27 = smov 0   ;;  %s1316_s28 = smov 0   ;;  %s1504_s0 = inlined_call_operand.vmem [shape: bf16[2,16,128], index: 0, kind: input, shape index: {}]   ;;  %s1505_s1 = inlined_call_operand.vmem [shape: bf16[2,16,128], index: 1, kind: input, shape index: {}]   ;;  %s1506_s2 = inlined_call_operand.vmem [shape: bf16[128,128], index: 2, kind: input, shape index: {}]   ;;  %s1507_s3 = inlined_call_operand.vmem [shape: f32[1,128], index: 3, kind: input, shape index: {}]   ;;  %s1508_s4 = inlined_call_operand.vmem [shape: bf16[128,256], index: 4, kind: input, shape index: {}]   ;;  %s1509_s5 = inlined_call_operand.vmem [shape: f32[1,256], index: 5, kind: input, shape index: {}]   ;;  %s1510_s6 = inlined_call_operand.vmem [shape: bf16[128,128], index: 6, kind: input, shape index: {}]   ;;  %s1511_s7 = inlined_call_operand.vmem [shape: f32[1,128], index: 7, kind: input, shape index: {}]   ;;  %s1512_s8 = inlined_call_operand.vmem [shape: f32[2,16,128], index: 8, kind: output, shape index: {}]  }
   0x1   :  { %s1318_s29 = smov 0  }
   0x2 LB: > { %s30_s30 = sadd.s32 1, %s1258_s28  ;;  %p1032_p0 = scmp.ge.s32.totalorder %s1262_s29, 1  ;;  %s1262_s29 = sphi %s1318_s29, %s18_s29   ;;  %s1258_s28 = sphi %s1316_s28, %s1514_s28   ;;  %s1254_s27 = sphi %s1314_s27, %s1513_s27  }
   0x3   : > { %p32_p1 = scmp.ge.s32.totalorder %s30_s30, 2  ;;  %p291_p2 = scmp.lt.s32.totalorder %s1262_s29, 3 }
   0x5   : > { %s1516_s30 = smov (%p32_p1, %s30_s30), 0  ;;  %p292_p3 = pnand %p1032_p0, %p291_p2 }
   0x6   : > { %v1186_v0 = vld [vmem:[%s1508_s4 + $0x4] ss:$8 sps:$4 sm:$0xff] (!%p292_p3)   ;;  %v1188_v1 = vld [vmem:[%s1508_s4] ss:$8 sps:$4 sm:$0xff] (!%p292_p3)   ;;  %v1264_v2 = vmov (!%p292_p3), 0.0   ;;  %v1265_v3 = vmov (!%p292_p3), 0   ;;  %v508_v28 = vlaneseq (!%p292_p3) }
   0x7   : > { %295 = sbr.rel (%p292_p3) target bundleno = 1284 (0x504), region = 52  ;;  %1103 = vmatprep.subr.bf16.mxu0 (!%p292_p3), %v1264_v2  ;;  %636 = vmatprep.mubr.bf16.mxu1 (!%p292_p3), %v1265_v3  ;;  %v1189_v4 = vld [vmem:[%s1508_s4 + $0x14] ss:$8 sps:$4 sm:$0xff] (!%p292_p3)   ;;  %v1191_v5 = vld [vmem:[%s1508_s4 + $0x10] ss:$8 sps:$4 sm:$0xff] (!%p292_p3)   ;;  %vm1266_vm0 = vmmov (!%p292_p3), 0  }
   0x8   : > { %604 = vmatprep.subr.bf16.mxu1 (!%p292_p3), %v1186_v0  ;;  %1119 = vmatprep.mubr.msk.bf16.mxu0 (!%p292_p3), %vm1266_vm0, %v1264_v2  ;;  %v1192_v6 = vld [vmem:[%s1506_s2] sm:$0xff] (!%p292_p3)   ;;  %v1196_v8 = vld [vmem:[%s1506_s2 + $0x8] sm:$0xff] (!%p292_p3)   ;;  %p334_p4 = scmp.lt.s32.totalorder (!%p292_p3), %s1254_s27, 1  ;;  %v1197_v10 = vld [vmem:[%s1508_s4 + $0x34] ss:$8 sps:$4 sm:$0xff] (!%p292_p3)   ;;  %v509_v29 = vshrl.u32 (!%p292_p3), %v508_v28, 7 }
   0x9   : > { %605 = vmatpush1.bf16.msra.mxu1 (!%p292_p3), %v1188_v1  ;;  %1184 = vset.pattern.permute.xlu1 (!%p292_p3), %v1265_v3  ;;  %v1193_v7 = vld [vmem:[%s1508_s4 + $0x24] ss:$8 sps:$4 sm:$0xff] (!%p292_p3)   ;;  %v1195_v9 = vld [vmem:[%s1508_s4 + $0x20] ss:$8 sps:$4 sm:$0xff] (!%p292_p3)   ;;  %v1200_v11 = vld [vmem:[%s1506_s2 + $0x10] sm:$0xff] (!%p292_p3)   ;;  %vm481_vm1 = vcmask (!%p292_p3), 7168  }
   0xa   : > { %606 = vmatprep.subr.bf16.mxu1 (!%p292_p3), %v1189_v4  ;;  %1185 = vset.pattern.permute.xlu0 (!%p292_p3), %v1265_v3  ;;  %v1199_v12 = vld [vmem:[%s1508_s4 + $0x30] ss:$8 sps:$4 sm:$0xff] (!%p292_p3)   ;;  %v1201_v13 = vld [vmem:[%s1508_s4 + $0x44] ss:$8 sps:$4 sm:$0xff] (!%p292_p3)   ;;  %v1203_v15 = vld [vmem:[%s1508_s4 + $0x40] ss:$8 sps:$4 sm:$0xff] (!%p292_p3)  }
   0xb   : > { %1104 = vmatpush3.bf16.msra.mxu0 (!%p292_p3), %v1192_v6  ;;  %v1204_v14 = vld [vmem:[%s1506_s2 + $0x18] sm:$0xff] (!%p292_p3)   ;;  %v1208_v17 = vld [vmem:[%s1506_s2 + $0x20] sm:$0xff] (!%p292_p3)   ;;  %v1212_v20 = vld [vmem:[%s1506_s2 + $0x28] sm:$0xff] (!%p292_p3)   ;;  %v510_v30 = vsub.s32 (!%p292_p3), 0, %v509_v29  ;;  %v514_v32 = vsub.s32 (!%p292_p3), 1, %v509_v29  ;;  %v1267_v53 = vmov (!%p292_p3), -inf  }
   0xc   : > { %1105 = vmatprep.subr.bf16.mxu0 (!%p292_p3), %v1264_v2  ;;  %v1205_v16 = vld [vmem:[%s1508_s4 + $0x54] ss:$8 sps:$4 sm:$0xff] (!%p292_p3)   ;;  %v1207_v18 = vld [vmem:[%s1508_s4 + $0x50] ss:$8 sps:$4 sm:$0xff] (!%p292_p3)   ;;  %v1209_v19 = vld [vmem:[%s1508_s4 + $0x64] ss:$8 sps:$4 sm:$0xff] (!%p292_p3)  }
   0xd   : > { %607 = vmatpush1.bf16.msra.mxu1 (!%p292_p3), %v1191_v5  ;;  %v1211_v21 = vld [vmem:[%s1508_s4 + $0x60] ss:$8 sps:$4 sm:$0xff] (!%p292_p3)   ;;  %v1213_v22 = vld [vmem:[%s1508_s4 + $0x74] ss:$8 sps:$4 sm:$0xff] (!%p292_p3)   ;;  %v1215_v24 = vld [vmem:[%s1508_s4 + $0x70] ss:$8 sps:$4 sm:$0xff] (!%p292_p3)  }
   0xe   : > { %608 = vmatprep.subr.bf16.mxu1 %v1193_v7  ;;  %s1518_s27 = smov (!%p334_p4, %s1254_s27), 1  ;;  %v1216_v23 = vld [vmem:[%s1506_s2 + $0x30] sm:$0xff]   ;;  %v1218_v25 = vld [vmem:[%s1506_s2 + $0x38] sm:$0xff]   ;;  %v506_v31 = vld [vmem:[%s1509_s5] sm:$0x3]  ;;  %482 = vst.msk [vmem:[#allocation3] sm:$0xff] %vm481_vm1, %v1267_v53 }
   0xf   : > { %1106 = vmatpush3.bf16.msra.mxu0 %v1196_v8  ;;  %s1078_s17 = sshll.u32 %s1518_s27, 3  ;;  %v511_v33 = vrot.slane %v506_v31, %v510_v30  ;;  %v515_v35 = vrot.slane %v506_v31, %v514_v32  ;;  %v1039_v36 = vld [vmem:[%s1507_s3] ss:$0 sm:$0xff]  ;;  %483 = vst.msk [vmem:[#allocation3 + $0x8] sm:$0xff] %vm481_vm1, %v1267_v53  ;;  %484 = vst.msk [vmem:[#allocation4] sm:$0xff] %vm481_vm1, %v1264_v2  ;;  %v651_v54 = vand.u32 127, %v508_v28 }
  0x10   : > { %1107 = vmatprep.subr.bf16.mxu0 %v1264_v2  ;;  %s347_s24 = scalar_lea.vmem %s1505_s1, %s1078_s17  ;;  %s338_s11 = scalar_lea.vmem %s1504_s0, %s1078_s17  ;;  %485 = vst.msk [vmem:[#allocation4 + $0x8] sm:$0xff] %vm481_vm1, %v1264_v2  ;;  %v1268_v55 = vmov -1e+30   ;;  %vm700_vm3 = vcmask 130048   ;;  %v1223_v28 = vld [vmem:[%s1510_s6 + $0x18] sm:$0xff]   ;;  %v1224_v29 = vld [vmem:[%s1510_s6 + $0x20] sm:$0xff]  }
  0x11   : > { %609 = vmatpush1.bf16.msra.mxu1 %v1195_v9  ;;  %v1217_v26 = vld [vmem:[%s347_s24] sm:$0xff]   ;;  %vm655_vm2 = vcmp.lt.s32.totalorder %v651_v54, 8  ;;  %v1225_v30 = vld [vmem:[%s1510_s6 + $0x28] sm:$0xff]  }
  0x12   : > { %610 = vmatprep.subr.bf16.mxu1 %v1197_v10  ;;  %v1219_v27 = vld [vmem:[%s338_s11] sm:$0xff]   ;;  %v656_v56 = vsel %vm655_vm2, 0.0, %v1268_v55  ;;  %s1080_s11 = sshll.u32 %s1518_s27, 4 }
  0x13   : > { %1108 = vmatpush3.bf16.msra.mxu0 %v1200_v11  ;;  %s353_s18 = scalar_lea.vmem %s1512_s8, %s1080_s11 }
  0x14   : > { %1109 = vmatprep.subr.bf16.mxu0 %v1264_v2 }
  0x15   : > { %611 = vmatpush1.bf16.msra.mxu1 %v1199_v12  ;;  %v698_v1 = vld [vmem:[#allocation3] sm:$0xff] }
  0x16   : > { %612 = vmatprep.subr.bf16.mxu1 %v1201_v13  ;;  %v699_v5 = vld [vmem:[#allocation3 + $0x8] sm:$0xff]  ;;  %v731_v31 = vld [vmem:[#allocation4] sm:$0xff] }
  0x17   : > { %1110 = vmatpush3.bf16.msra.mxu0 %v1204_v14 }
  0x18   : > { %1111 = vmatprep.subr.bf16.mxu0 %v1264_v2 }
  0x19   : > { %613 = vmatpush1.bf16.msra.mxu1 %v1203_v15 }
  0x1a   : > { %614 = vmatprep.subr.bf16.mxu1 %v1205_v16 }
  0x1b   : > { %1112 = vmatpush3.bf16.msra.mxu0 %v1208_v17 }
  0x1c   : > { %1113 = vmatprep.subr.bf16.mxu0 %v1264_v2 }
  0x1d   : > { %615 = vmatpush1.bf16.msra.mxu1 %v1207_v18 }
  0x1e   : > { %616 = vmatprep.subr.bf16.mxu1 %v1209_v19 }
  0x1f   : > { %1114 = vmatpush3.bf16.msra.mxu0 %v1212_v20 }
  0x20   : > { %1115 = vmatprep.subr.bf16.mxu0 %v1264_v2 }
  0x21   : > { %617 = vmatpush1.bf16.msra.mxu1 %v1211_v21 }
  0x22   : > { %618 = vmatprep.subr.bf16.mxu1 %v1213_v22 }
  0x23   : > { %1116 = vmatpush3.bf16.msra.mxu0 %v1216_v23 }
  0x24   : > { %1117 = vmatprep.subr.bf16.mxu0 %v1264_v2 }
  0x25   : > { %619 = vmatpush1.bf16.msra.mxu1 %v1215_v24 }
  0x26   : > { %1123 = vmatprep.subr.bf16.mxu1 %v1264_v2 }
  0x27   : > { %1118 = vmatpush3.bf16.msra.mxu0 %v1218_v25  ;;  %v1220_v25 = vld [vmem:[%s1510_s6] sm:$0xff]  }
  0x28   : > { %637 = vmatmul.mubr.bf16.vlgmr.msra.gmra.mrb[0].mxu1 %v1217_v26  ;;  %1135 = vmatprep.subr.bf16.mxu0 %v1264_v2  ;;  %v1221_v26 = vld [vmem:[%s1510_s6 + $0x8] sm:$0xff]  }
  0x29   : > { %1125 = vmatprep.mubr.msk.bf16.mxu1 %vm1266_vm0, %v1264_v2 }
  0x2a   : > { %1120 = vmatmul.mubr.bf16.vlgmr.msra.gmra.mrb[0].mxu0 %v1219_v27  ;;  %v1222_v27 = vld [vmem:[%s1510_s6 + $0x10] sm:$0xff]  }
  0x2b   : > { %1151 = vmatprep.mubr.msk.bf16.mxu0 %vm1266_vm0, %v1264_v2  ;;  %1136 = vmatpush3.bf16.msra.mxu0 %v1220_v25 }
  0x2c   : > { %1137 = vmatprep.subr.bf16.mxu0 %v1264_v2 }
  0x2f   : > { %1138 = vmatpush3.bf16.msra.mxu0 %v1221_v26 }
  0x30   : > { %1139 = vmatprep.subr.bf16.mxu0 %v1264_v2 }
  0x33   : > { %1140 = vmatpush3.bf16.msra.mxu0 %v1222_v27 }
  0x34   : > { %1141 = vmatprep.subr.bf16.mxu0 %v1264_v2 }
  0x37   : > { %1142 = vmatpush3.bf16.msra.mxu0 %v1223_v28 }
  0x38   : > { %1143 = vmatprep.subr.bf16.mxu0 %v1264_v2 }
  0x3b   : > { %1144 = vmatpush3.bf16.msra.mxu0 %v1224_v29 }
  0x3c   : > { %1145 = vmatprep.subr.bf16.mxu0 %v1264_v2 }
  0x3f   : > { %1146 = vmatpush3.bf16.msra.mxu0 %v1225_v30 }
  0x40   : > { %1147 = vmatprep.subr.bf16.mxu0 %v1264_v2 }
  0xfb   : > { %v638_v34 = vpop.f32.mrb[0].mxu1 }
  0xfc   : > { %v640_v37 = vpop.f32.mrb[1].mxu1  ;;  %v639_v40 = vadd.f32 %v638_v34, %v511_v33  ;;  %v732_v34 = vld [vmem:[#allocation4 + $0x8] sm:$0xff] }
  0xfd   : > { %v642_v38 = vpop.f32.mrb[2].mxu1  ;;  %v472_v39 = vpop.f32.mrb[0].mxu0  ;;  %v641_v45 = vadd.f32 %v640_v37, %v515_v35 }
  0xfe   : > { %v643_v41 = vadd.f32 %v642_v38, %v511_v33  ;;  %v644_v42 = vpop.f32.mrb[3].mxu1  ;;  %v473_v43 = vadd.f32 %v1039_v36, %v472_v39  ;;  %v1121_v44 = vpop.f32.mrb[1].mxu0 }
  0xff   : > { %v645_v46 = vadd.f32 %v644_v42, %v515_v35  ;;  %v475_v47 = vpop.f32.mrb[2].mxu0  ;;  %v1226_v42 = vld [vmem:[%s1510_s6 + $0x30] sm:$0xff]   ;;  %v1227_v44 = vld [vmem:[%s1510_s6 + $0x38] sm:$0xff]  }
 0x100   : > { %v647_v48 = vpack.c.bf16 %v643_v41, %v639_v40  ;;  %v476_v49 = vadd.f32 %v1039_v36, %v475_v47  ;;  %v1122_v50 = vpop.f32.mrb[3].mxu0  ;;  %1148 = vmatpush3.bf16.msra.mxu0 %v1226_v42 }
 0x101   : > { %v648_v51 = vpack.c.bf16 %v645_v46, %v641_v45  ;;  %1149 = vmatprep.subr.bf16.mxu0 %v1264_v2 }
 0x102   : > { %v479_v52 = vpack.c.bf16 %v476_v49, %v473_v43  ;;  %1124 = vmatpush3.bf16.xpose.msra.mxu1 %v647_v48 }
 0x103   : > { %1129 = vmatprep.subr.bf16.mxu1 %v1264_v2 }
 0x104   : > { %1150 = vmatpush3.bf16.msra.mxu0 %v1227_v44 }
 0x109   : > { %1126 = vmatmul.mubr.bf16.vlgmr.msra.gmra.mrb[4].mxu1 %v479_v52 }
 0x10a   : > { %1130 = vmatpush3.bf16.msra.mxu1 %v648_v51  ;;  %1131 = vmatprep.mubr.msk.bf16.mxu1 %vm1266_vm0, %v1264_v2 }
 0x1dc   : > { %v691_v57 = vpop.f32.mrb[4].mxu1 }
 0x1dd   : > { %v692_v58 = vadd.f32 %v691_v57, %v656_v56  ;;  %v1127_v59 = vpop.f32.mrb[5].mxu1 }
 0x1de   : > { %v694_v60 = vpop.f32.mrb[6].mxu1  ;;  %v1067_v59 = vld [vmem:[%s1511_s7] ss:$0 sm:$0xff] }
 0x1df   : > { %v695_v61 = vadd.f32 %v694_v60, %v656_v56  ;;  %v1128_v62 = vpop.f32.mrb[7].mxu1  ;;  %v701_v63 = vsel %vm700_vm3, %v692_v58, -inf }
 0x1e0   : > { %702 = vmax.xlane.f32.xlu0 %v701_v63 }
 0x1e1   : > { %v704_v0 = vsel %vm700_vm3, %v695_v61, -inf }
 0x1e4   : > { %705 = vmax.xlane.f32.xlu0 %v704_v0 }
 0x26d   : > { %v703_v3 = vpop.xlane.xlu0 %702 }
 0x26e   : > { %v707_v4 = vmax.f32 %v698_v1, %v703_v3 }
 0x270   : > { %v709_v6 = vsub.f32 %v698_v1, %v707_v4  ;;  %809 = vst.msk [vmem:[#allocation3] sm:$0xff] %vm481_vm1, %v707_v4  ;;  %717 = vperm.xlu1 %1184, %v707_v4  }
 0x271   : > { %v706_v7 = vpop.xlane.xlu0 %705 }
 0x272   : > { %v708_v8 = vmax.f32 %v699_v5, %v706_v7  ;;  %v711_v22 = vmul.f32 1.442695, %v709_v6 }
 0x274   : > { %v710_v9 = vsub.f32 %v699_v5, %v708_v8  ;;  %810 = vst.msk [vmem:[#allocation3 + $0x8] sm:$0xff] %vm481_vm1, %v708_v8  ;;  %722 = vperm.xlu1 %1184, %v708_v8  }
 0x276   : > { %v713_v21 = vmul.f32 1.442695, %v710_v9 }
 0x2ef   : > { %v718_v10 = vpop.permute.xlu1 %717 }
 0x2f0   : > { %v725_v11 = vsub.f32 %v692_v58, %v718_v10 }
 0x2f2   : > { %v727_v12 = vmul.f32 1.442695, %v725_v11 }
 0x2f3   : > { %v723_v13 = vpop.permute.xlu1 %722 }
 0x2f4   : > { %1228 = vpow2.f32 %v727_v12  ;;  %v726_v14 = vsub.f32 %v695_v61, %v723_v13 }
 0x2f6   : > { %v729_v15 = vmul.f32 1.442695, %v726_v14 }
 0x2f8   : > { %1230 = vpow2.f32 %v729_v15 }
 0x2f9   : > { %1232 = vpow2.f32 %v713_v21 }
 0x2fa   : > { %1234 = vpow2.f32 %v711_v22 }
 0x2fe   : > { %v1229_v16 = vpop.eup %1228 }
 0x2ff   : > { %v735_v17 = vsel %vm700_vm3, %v1229_v16, 0.0 }
 0x300   : > { %736 = vadd.xlane.f32.xlu0 %v735_v17 }
 0x302   : > { %v1231_v18 = vpop.eup %1230 }
 0x303   : > { %v738_v19 = vsel %vm700_vm3, %v1231_v18, 0.0  ;;  %v760_v20 = vpack.c.bf16 %v1231_v18, %v1229_v16  ;;  %v1233_v23 = vpop.eup %1232 }
 0x304   : > { %739 = vadd.xlane.f32.xlu1 %v738_v19  ;;  %v1235_v24 = vpop.eup %1234  ;;  %v734_v36 = vmul.f32 %v1233_v23, %v732_v34 }
 0x305   : > { %1132 = vmatmul.mubr.msk.bf16.vlgmr.msra.gmra.mrb[8].mxu1 %vm700_vm3, %v760_v20  ;;  %v733_v32 = vmul.f32 %v1235_v24, %v731_v31 }
 0x315   : > { %755 = vperm.xlu1 %1184, %v1233_v23  }
 0x316   : > { %750 = vperm.xlu0 %1185, %v1235_v24  }
 0x38d   : > { %v737_v33 = vpop.xlane.xlu0 %736 }
 0x38e   : > { %v741_v35 = vadd.f32 %v737_v33, %v733_v32 }
 0x390   : > { %744 = vst.msk [vmem:[#allocation4] sm:$0xff] %vm481_vm1, %v741_v35 }
 0x391   : > { %v740_v37 = vpop.xlane.xlu1 %739 }
 0x392   : > { %v742_v38 = vadd.f32 %v740_v37, %v734_v36 }
 0x394   : > { %745 = vst.msk [vmem:[#allocation4 + $0x8] sm:$0xff] %vm481_vm1, %v742_v38 }
 0x395   : > { %v751_v49 = vpop.permute.xlu0 %750  ;;  %v756_v50 = vpop.permute.xlu1 %755 }
 0x396   : > { %v759_v52 = vmul.f32 0.0, %v756_v50  ;;  %v758_v53 = vmul.f32 0.0, %v751_v49 }
 0x397   : > { %v816_v39 = vld [vmem:[#allocation4] sm:$0xff] }
 0x398   : > { %1236 = vrcp.f32 %v816_v39 }
 0x39b   : > { %v817_v40 = vld [vmem:[#allocation4 + $0x8] sm:$0xff] }
 0x39c   : > { %1238 = vrcp.f32 %v817_v40 }
 0x3a2   : > { %v1237_v41 = vpop.eup %1236 }
 0x3a3   : > { %822 = vperm.xlu0 %1185, %v1237_v41  }
 0x3a6   : > { %v1239_v43 = vpop.eup %1238 }
 0x3a7   : > { %827 = vperm.xlu0 %1185, %v1239_v43  }
 0x3d8   : > { %v798_v45 = vpop.f32.mrb[8].mxu1 }
 0x3d9   : > { %v1133_v46 = vpop.f32.mrb[9].mxu1  ;;  %v805_v54 = vadd.f32 %v798_v45, %v758_v53 }
 0x3da   : > { %v801_v47 = vpop.f32.mrb[10].mxu1 }
 0x3db   : > { %v1134_v48 = vpop.f32.mrb[11].mxu1  ;;  %v806_v55 = vadd.f32 %v801_v47, %v759_v52 }
 0x422   : > { %v823_v51 = vpop.permute.xlu0 %822 }
 0x423   : > { %v830_v56 = vmul.f32 %v823_v51, %v805_v54 }
 0x426   : > { %v828_v2 = vpop.permute.xlu0 %827 }
 0x427   : > { %v831_v57 = vmul.f32 %v828_v2, %v806_v55 }
 0x429   : > { %v832_v58 = vpack.c.bf16 %v831_v57, %v830_v56 }
 0x42b   : > { %1152 = vmatmul.mubr.bf16.vlgmr.msra.gmra.mrb[4].mxu0 %v832_v58 }
 0x4fe   : > { %v938_v60 = vpop.f32.mrb[4].mxu0 }
 0x4ff   : > { %v939_v61 = vadd.f32 %v1067_v59, %v938_v60  ;;  %v1153_v62 = vpop.f32.mrb[5].mxu0 }
 0x500   : > { %v941_v63 = vpop.f32.mrb[6].mxu0 }
 0x501   : > { %945 = vst [vmem:[%s353_s18] sm:$0xff] %v939_v61  ;;  %v942_v0 = vadd.f32 %v1067_v59, %v941_v63  ;;  %v1154_v1 = vpop.f32.mrb[7].mxu0 }
 0x503   : > { %946 = vst [vmem:[%s353_s18 + $0x8] sm:$0xff] %v942_v0 }
 0x504 PF: > { %s18_s29 = sadd.s32 1, %s1262_s29   ;;  %s1513_s27 = smov %s1258_s28 }
 0x505   : > { %p15_p5 = scmp.ge.s32.totalorder %s18_s29, 4   ;;  %s1514_s28 = smov %s1516_s30 }
 0x507   :  { %17 = sbr.rel (!%p15_p5) target bundleno = 2 (0x2), region = 93 }

// kernel: _simple_attention_impl.1
= control target key start
LH: loop header
LB: loop body
LE: loop exit
PB: predicated region body
PF: predicated region fallthrough
CT: control target
= control target key end

     0   :  { %s1314_s27 = smov 0   ;;  %s1316_s28 = smov 0   ;;  %s1504_s0 = inlined_call_operand.vmem [shape: bf16[2,16,128], index: 0, kind: input, shape index: {}]   ;;  %s1505_s1 = inlined_call_operand.vmem [shape: bf16[2,16,128], index: 1, kind: input, shape index: {}]   ;;  %s1506_s2 = inlined_call_operand.vmem [shape: bf16[128,128], index: 2, kind: input, shape index: {}]   ;;  %s1507_s3 = inlined_call_operand.vmem [shape: f32[1,128], index: 3, kind: input, shape index: {}]   ;;  %s1508_s4 = inlined_call_operand.vmem [shape: bf16[128,256], index: 4, kind: input, shape index: {}]   ;;  %s1509_s5 = inlined_call_operand.vmem [shape: f32[1,256], index: 5, kind: input, shape index: {}]   ;;  %s1510_s6 = inlined_call_operand.vmem [shape: bf16[128,128], index: 6, kind: input, shape index: {}]   ;;  %s1511_s7 = inlined_call_operand.vmem [shape: f32[1,128], index: 7, kind: input, shape index: {}]   ;;  %s1512_s8 = inlined_call_operand.vmem [shape: f32[2,16,128], index: 8, kind: output, shape index: {}]  }
   0x1   :  { %s1318_s29 = smov 0  }
   0x2 LB: > { %s30_s30 = sadd.s32 1, %s1258_s28  ;;  %p1032_p0 = scmp.ge.s32.totalorder %s1262_s29, 1  ;;  %s1262_s29 = sphi %s1318_s29, %s18_s29   ;;  %s1258_s28 = sphi %s1316_s28, %s1514_s28   ;;  %s1254_s27 = sphi %s1314_s27, %s1513_s27  }
   0x3   : > { %p32_p1 = scmp.ge.s32.totalorder %s30_s30, 2  ;;  %p291_p2 = scmp.lt.s32.totalorder %s1262_s29, 3 }
   0x5   : > { %s1516_s30 = smov (%p32_p1, %s30_s30), 0  ;;  %p292_p3 = pnand %p1032_p0, %p291_p2 }
   0x6   : > { %v1186_v0 = vld [vmem:[%s1508_s4 + $0x4] ss:$8 sps:$4 sm:$0xff] (!%p292_p3)   ;;  %v1188_v1 = vld [vmem:[%s1508_s4] ss:$8 sps:$4 sm:$0xff] (!%p292_p3)   ;;  %v1264_v2 = vmov (!%p292_p3), 0.0   ;;  %v1265_v3 = vmov (!%p292_p3), 0   ;;  %v508_v28 = vlaneseq (!%p292_p3) }
   0x7   : > { %295 = sbr.rel (%p292_p3) target bundleno = 1284 (0x504), region = 52  ;;  %1103 = vmatprep.subr.bf16.mxu0 (!%p292_p3), %v1264_v2  ;;  %636 = vmatprep.mubr.bf16.mxu1 (!%p292_p3), %v1265_v3  ;;  %v1189_v4 = vld [vmem:[%s1508_s4 + $0x14] ss:$8 sps:$4 sm:$0xff] (!%p292_p3)   ;;  %v1191_v5 = vld [vmem:[%s1508_s4 + $0x10] ss:$8 sps:$4 sm:$0xff] (!%p292_p3)   ;;  %vm1266_vm0 = vmmov (!%p292_p3), 0  }
   0x8   : > { %604 = vmatprep.subr.bf16.mxu1 (!%p292_p3), %v1186_v0  ;;  %1119 = vmatprep.mubr.msk.bf16.mxu0 (!%p292_p3), %vm1266_vm0, %v1264_v2  ;;  %v1192_v6 = vld [vmem:[%s1506_s2] sm:$0xff] (!%p292_p3)   ;;  %v1196_v8 = vld [vmem:[%s1506_s2 + $0x8] sm:$0xff] (!%p292_p3)   ;;  %p334_p4 = scmp.lt.s32.totalorder (!%p292_p3), %s1254_s27, 1  ;;  %v1197_v10 = vld [vmem:[%s1508_s4 + $0x34] ss:$8 sps:$4 sm:$0xff] (!%p292_p3)   ;;  %v509_v29 = vshrl.u32 (!%p292_p3), %v508_v28, 7 }
   0x9   : > { %605 = vmatpush1.bf16.msra.mxu1 (!%p292_p3), %v1188_v1  ;;  %1184 = vset.pattern.permute.xlu1 (!%p292_p3), %v1265_v3  ;;  %v1193_v7 = vld [vmem:[%s1508_s4 + $0x24] ss:$8 sps:$4 sm:$0xff] (!%p292_p3)   ;;  %v1195_v9 = vld [vmem:[%s1508_s4 + $0x20] ss:$8 sps:$4 sm:$0xff] (!%p292_p3)   ;;  %v1200_v11 = vld [vmem:[%s1506_s2 + $0x10] sm:$0xff] (!%p292_p3)   ;;  %vm481_vm1 = vcmask (!%p292_p3), 7168  }
   0xa   : > { %606 = vmatprep.subr.bf16.mxu1 (!%p292_p3), %v1189_v4  ;;  %1185 = vset.pattern.permute.xlu0 (!%p292_p3), %v1265_v3  ;;  %v1199_v12 = vld [vmem:[%s1508_s4 + $0x30] ss:$8 sps:$4 sm:$0xff] (!%p292_p3)   ;;  %v1201_v13 = vld [vmem:[%s1508_s4 + $0x44] ss:$8 sps:$4 sm:$0xff] (!%p292_p3)   ;;  %v1203_v15 = vld [vmem:[%s1508_s4 + $0x40] ss:$8 sps:$4 sm:$0xff] (!%p292_p3)  }
   0xb   : > { %1104 = vmatpush3.bf16.msra.mxu0 (!%p292_p3), %v1192_v6  ;;  %v1204_v14 = vld [vmem:[%s1506_s2 + $0x18] sm:$0xff] (!%p292_p3)   ;;  %v1208_v17 = vld [vmem:[%s1506_s2 + $0x20] sm:$0xff] (!%p292_p3)   ;;  %v1212_v20 = vld [vmem:[%s1506_s2 + $0x28] sm:$0xff] (!%p292_p3)   ;;  %v510_v30 = vsub.s32 (!%p292_p3), 0, %v509_v29  ;;  %v514_v32 = vsub.s32 (!%p292_p3), 1, %v509_v29  ;;  %v1267_v53 = vmov (!%p292_p3), -inf  }
   0xc   : > { %1105 = vmatprep.subr.bf16.mxu0 (!%p292_p3), %v1264_v2  ;;  %v1205_v16 = vld [vmem:[%s1508_s4 + $0x54] ss:$8 sps:$4 sm:$0xff] (!%p292_p3)   ;;  %v1207_v18 = vld [vmem:[%s1508_s4 + $0x50] ss:$8 sps:$4 sm:$0xff] (!%p292_p3)   ;;  %v1209_v19 = vld [vmem:[%s1508_s4 + $0x64] ss:$8 sps:$4 sm:$0xff] (!%p292_p3)  }
   0xd   : > { %607 = vmatpush1.bf16.msra.mxu1 (!%p292_p3), %v1191_v5  ;;  %v1211_v21 = vld [vmem:[%s1508_s4 + $0x60] ss:$8 sps:$4 sm:$0xff] (!%p292_p3)   ;;  %v1213_v22 = vld [vmem:[%s1508_s4 + $0x74] ss:$8 sps:$4 sm:$0xff] (!%p292_p3)   ;;  %v1215_v24 = vld [vmem:[%s1508_s4 + $0x70] ss:$8 sps:$4 sm:$0xff] (!%p292_p3)  }
   0xe   : > { %608 = vmatprep.subr.bf16.mxu1 %v1193_v7  ;;  %s1518_s27 = smov (!%p334_p4, %s1254_s27), 1  ;;  %v1216_v23 = vld [vmem:[%s1506_s2 + $0x30] sm:$0xff]   ;;  %v1218_v25 = vld [vmem:[%s1506_s2 + $0x38] sm:$0xff]   ;;  %v506_v31 = vld [vmem:[%s1509_s5] sm:$0x3]  ;;  %482 = vst.msk [vmem:[#allocation3] sm:$0xff] %vm481_vm1, %v1267_v53 }
   0xf   : > { %1106 = vmatpush3.bf16.msra.mxu0 %v1196_v8  ;;  %s1078_s17 = sshll.u32 %s1518_s27, 3  ;;  %v511_v33 = vrot.slane %v506_v31, %v510_v30  ;;  %v515_v35 = vrot.slane %v506_v31, %v514_v32  ;;  %v1039_v36 = vld [vmem:[%s1507_s3] ss:$0 sm:$0xff]  ;;  %483 = vst.msk [vmem:[#allocation3 + $0x8] sm:$0xff] %vm481_vm1, %v1267_v53  ;;  %484 = vst.msk [vmem:[#allocation4] sm:$0xff] %vm481_vm1, %v1264_v2  ;;  %v651_v54 = vand.u32 127, %v508_v28 }
  0x10   : > { %1107 = vmatprep.subr.bf16.mxu0 %v1264_v2  ;;  %s347_s24 = scalar_lea.vmem %s1505_s1, %s1078_s17  ;;  %s338_s11 = scalar_lea.vmem %s1504_s0, %s1078_s17  ;;  %485 = vst.msk [vmem:[#allocation4 + $0x8] sm:$0xff] %vm481_vm1, %v1264_v2  ;;  %v1268_v55 = vmov -1e+30   ;;  %vm700_vm3 = vcmask 130048   ;;  %v1223_v28 = vld [vmem:[%s1510_s6 + $0x18] sm:$0xff]   ;;  %v1224_v29 = vld [vmem:[%s1510_s6 + $0x20] sm:$0xff]  }
  0x11   : > { %609 = vmatpush1.bf16.msra.mxu1 %v1195_v9  ;;  %v1217_v26 = vld [vmem:[%s347_s24] sm:$0xff]   ;;  %vm655_vm2 = vcmp.lt.s32.totalorder %v651_v54, 8  ;;  %v1225_v30 = vld [vmem:[%s1510_s6 + $0x28] sm:$0xff]  }
  0x12   : > { %610 = vmatprep.subr.bf16.mxu1 %v1197_v10  ;;  %v1219_v27 = vld [vmem:[%s338_s11] sm:$0xff]   ;;  %v656_v56 = vsel %vm655_vm2, 0.0, %v1268_v55  ;;  %s1080_s11 = sshll.u32 %s1518_s27, 4 }
  0x13   : > { %1108 = vmatpush3.bf16.msra.mxu0 %v1200_v11  ;;  %s353_s18 = scalar_lea.vmem %s1512_s8, %s1080_s11 }
  0x14   : > { %1109 = vmatprep.subr.bf16.mxu0 %v1264_v2 }
  0x15   : > { %611 = vmatpush1.bf16.msra.mxu1 %v1199_v12  ;;  %v698_v1 = vld [vmem:[#allocation3] sm:$0xff] }
  0x16   : > { %612 = vmatprep.subr.bf16.mxu1 %v1201_v13  ;;  %v699_v5 = vld [vmem:[#allocation3 + $0x8] sm:$0xff]  ;;  %v731_v31 = vld [vmem:[#allocation4] sm:$0xff] }
  0x17   : > { %1110 = vmatpush3.bf16.msra.mxu0 %v1204_v14 }
  0x18   : > { %1111 = vmatprep.subr.bf16.mxu0 %v1264_v2 }
  0x19   : > { %613 = vmatpush1.bf16.msra.mxu1 %v1203_v15 }
  0x1a   : > { %614 = vmatprep.subr.bf16.mxu1 %v1205_v16 }
  0x1b   : > { %1112 = vmatpush3.bf16.msra.mxu0 %v1208_v17 }
  0x1c   : > { %1113 = vmatprep.subr.bf16.mxu0 %v1264_v2 }
  0x1d   : > { %615 = vmatpush1.bf16.msra.mxu1 %v1207_v18 }
  0x1e   : > { %616 = vmatprep.subr.bf16.mxu1 %v1209_v19 }
  0x1f   : > { %1114 = vmatpush3.bf16.msra.mxu0 %v1212_v20 }
  0x20   : > { %1115 = vmatprep.subr.bf16.mxu0 %v1264_v2 }
  0x21   : > { %617 = vmatpush1.bf16.msra.mxu1 %v1211_v21 }
  0x22   : > { %618 = vmatprep.subr.bf16.mxu1 %v1213_v22 }
  0x23   : > { %1116 = vmatpush3.bf16.msra.mxu0 %v1216_v23 }
  0x24   : > { %1117 = vmatprep.subr.bf16.mxu0 %v1264_v2 }
  0x25   : > { %619 = vmatpush1.bf16.msra.mxu1 %v1215_v24 }
  0x26   : > { %1123 = vmatprep.subr.bf16.mxu1 %v1264_v2 }
  0x27   : > { %1118 = vmatpush3.bf16.msra.mxu0 %v1218_v25  ;;  %v1220_v25 = vld [vmem:[%s1510_s6] sm:$0xff]  }
  0x28   : > { %637 = vmatmul.mubr.bf16.vlgmr.msra.gmra.mrb[0].mxu1 %v1217_v26  ;;  %1135 = vmatprep.subr.bf16.mxu0 %v1264_v2  ;;  %v1221_v26 = vld [vmem:[%s1510_s6 + $0x8] sm:$0xff]  }
  0x29   : > { %1125 = vmatprep.mubr.msk.bf16.mxu1 %vm1266_vm0, %v1264_v2 }
  0x2a   : > { %1120 = vmatmul.mubr.bf16.vlgmr.msra.gmra.mrb[0].mxu0 %v1219_v27  ;;  %v1222_v27 = vld [vmem:[%s1510_s6 + $0x10] sm:$0xff]  }
  0x2b   : > { %1151 = vmatprep.mubr.msk.bf16.mxu0 %vm1266_vm0, %v1264_v2  ;;  %1136 = vmatpush3.bf16.msra.mxu0 %v1220_v25 }
  0x2c   : > { %1137 = vmatprep.subr.bf16.mxu0 %v1264_v2 }
  0x2f   : > { %1138 = vmatpush3.bf16.msra.mxu0 %v1221_v26 }
  0x30   : > { %1139 = vmatprep.subr.bf16.mxu0 %v1264_v2 }
  0x33   : > { %1140 = vmatpush3.bf16.msra.mxu0 %v1222_v27 }
  0x34   : > { %1141 = vmatprep.subr.bf16.mxu0 %v1264_v2 }
  0x37   : > { %1142 = vmatpush3.bf16.msra.mxu0 %v1223_v28 }
  0x38   : > { %1143 = vmatprep.subr.bf16.mxu0 %v1264_v2 }
  0x3b   : > { %1144 = vmatpush3.bf16.msra.mxu0 %v1224_v29 }
  0x3c   : > { %1145 = vmatprep.subr.bf16.mxu0 %v1264_v2 }
  0x3f   : > { %1146 = vmatpush3.bf16.msra.mxu0 %v1225_v30 }
  0x40   : > { %1147 = vmatprep.subr.bf16.mxu0 %v1264_v2 }
  0xfb   : > { %v638_v34 = vpop.f32.mrb[0].mxu1 }
  0xfc   : > { %v640_v37 = vpop.f32.mrb[1].mxu1  ;;  %v639_v40 = vadd.f32 %v638_v34, %v511_v33  ;;  %v732_v34 = vld [vmem:[#allocation4 + $0x8] sm:$0xff] }
  0xfd   : > { %v642_v38 = vpop.f32.mrb[2].mxu1  ;;  %v472_v39 = vpop.f32.mrb[0].mxu0  ;;  %v641_v45 = vadd.f32 %v640_v37, %v515_v35 }
  0xfe   : > { %v643_v41 = vadd.f32 %v642_v38, %v511_v33  ;;  %v644_v42 = vpop.f32.mrb[3].mxu1  ;;  %v473_v43 = vadd.f32 %v1039_v36, %v472_v39  ;;  %v1121_v44 = vpop.f32.mrb[1].mxu0 }
  0xff   : > { %v645_v46 = vadd.f32 %v644_v42, %v515_v35  ;;  %v475_v47 = vpop.f32.mrb[2].mxu0  ;;  %v1226_v42 = vld [vmem:[%s1510_s6 + $0x30] sm:$0xff]   ;;  %v1227_v44 = vld [vmem:[%s1510_s6 + $0x38] sm:$0xff]  }
 0x100   : > { %v647_v48 = vpack.c.bf16 %v643_v41, %v639_v40  ;;  %v476_v49 = vadd.f32 %v1039_v36, %v475_v47  ;;  %v1122_v50 = vpop.f32.mrb[3].mxu0  ;;  %1148 = vmatpush3.bf16.msra.mxu0 %v1226_v42 }
 0x101   : > { %v648_v51 = vpack.c.bf16 %v645_v46, %v641_v45  ;;  %1149 = vmatprep.subr.bf16.mxu0 %v1264_v2 }
 0x102   : > { %v479_v52 = vpack.c.bf16 %v476_v49, %v473_v43  ;;  %1124 = vmatpush3.bf16.xpose.msra.mxu1 %v647_v48 }
 0x103   : > { %1129 = vmatprep.subr.bf16.mxu1 %v1264_v2 }
 0x104   : > { %1150 = vmatpush3.bf16.msra.mxu0 %v1227_v44 }
 0x109   : > { %1126 = vmatmul.mubr.bf16.vlgmr.msra.gmra.mrb[4].mxu1 %v479_v52 }
 0x10a   : > { %1130 = vmatpush3.bf16.msra.mxu1 %v648_v51  ;;  %1131 = vmatprep.mubr.msk.bf16.mxu1 %vm1266_vm0, %v1264_v2 }
 0x1dc   : > { %v691_v57 = vpop.f32.mrb[4].mxu1 }
 0x1dd   : > { %v692_v58 = vadd.f32 %v691_v57, %v656_v56  ;;  %v1127_v59 = vpop.f32.mrb[5].mxu1 }
 0x1de   : > { %v694_v60 = vpop.f32.mrb[6].mxu1  ;;  %v1067_v59 = vld [vmem:[%s1511_s7] ss:$0 sm:$0xff] }
 0x1df   : > { %v695_v61 = vadd.f32 %v694_v60, %v656_v56  ;;  %v1128_v62 = vpop.f32.mrb[7].mxu1  ;;  %v701_v63 = vsel %vm700_vm3, %v692_v58, -inf }
 0x1e0   : > { %702 = vmax.xlane.f32.xlu0 %v701_v63 }
 0x1e1   : > { %v704_v0 = vsel %vm700_vm3, %v695_v61, -inf }
 0x1e4   : > { %705 = vmax.xlane.f32.xlu0 %v704_v0 }
 0x26d   : > { %v703_v3 = vpop.xlane.xlu0 %702 }
 0x26e   : > { %v707_v4 = vmax.f32 %v698_v1, %v703_v3 }
 0x270   : > { %v709_v6 = vsub.f32 %v698_v1, %v707_v4  ;;  %809 = vst.msk [vmem:[#allocation3] sm:$0xff] %vm481_vm1, %v707_v4  ;;  %717 = vperm.xlu1 %1184, %v707_v4  }
 0x271   : > { %v706_v7 = vpop.xlane.xlu0 %705 }
 0x272   : > { %v708_v8 = vmax.f32 %v699_v5, %v706_v7  ;;  %v711_v22 = vmul.f32 1.442695, %v709_v6 }
 0x274   : > { %v710_v9 = vsub.f32 %v699_v5, %v708_v8  ;;  %810 = vst.msk [vmem:[#allocation3 + $0x8] sm:$0xff] %vm481_vm1, %v708_v8  ;;  %722 = vperm.xlu1 %1184, %v708_v8  }
 0x276   : > { %v713_v21 = vmul.f32 1.442695, %v710_v9 }
 0x2ef   : > { %v718_v10 = vpop.permute.xlu1 %717 }
 0x2f0   : > { %v725_v11 = vsub.f32 %v692_v58, %v718_v10 }
 0x2f2   : > { %v727_v12 = vmul.f32 1.442695, %v725_v11 }
 0x2f3   : > { %v723_v13 = vpop.permute.xlu1 %722 }
 0x2f4   : > { %1228 = vpow2.f32 %v727_v12  ;;  %v726_v14 = vsub.f32 %v695_v61, %v723_v13 }
 0x2f6   : > { %v729_v15 = vmul.f32 1.442695, %v726_v14 }
 0x2f8   : > { %1230 = vpow2.f32 %v729_v15 }
 0x2f9   : > { %1232 = vpow2.f32 %v713_v21 }
 0x2fa   : > { %1234 = vpow2.f32 %v711_v22 }
 0x2fe   : > { %v1229_v16 = vpop.eup %1228 }
 0x2ff   : > { %v735_v17 = vsel %vm700_vm3, %v1229_v16, 0.0 }
 0x300   : > { %736 = vadd.xlane.f32.xlu0 %v735_v17 }
 0x302   : > { %v1231_v18 = vpop.eup %1230 }
 0x303   : > { %v738_v19 = vsel %vm700_vm3, %v1231_v18, 0.0  ;;  %v760_v20 = vpack.c.bf16 %v1231_v18, %v1229_v16  ;;  %v1233_v23 = vpop.eup %1232 }
 0x304   : > { %739 = vadd.xlane.f32.xlu1 %v738_v19  ;;  %v1235_v24 = vpop.eup %1234  ;;  %v734_v36 = vmul.f32 %v1233_v23, %v732_v34 }
 0x305   : > { %1132 = vmatmul.mubr.msk.bf16.vlgmr.msra.gmra.mrb[8].mxu1 %vm700_vm3, %v760_v20  ;;  %v733_v32 = vmul.f32 %v1235_v24, %v731_v31 }
 0x315   : > { %755 = vperm.xlu1 %1184, %v1233_v23  }
 0x316   : > { %750 = vperm.xlu0 %1185, %v1235_v24  }
 0x38d   : > { %v737_v33 = vpop.xlane.xlu0 %736 }
 0x38e   : > { %v741_v35 = vadd.f32 %v737_v33, %v733_v32 }
 0x390   : > { %744 = vst.msk [vmem:[#allocation4] sm:$0xff] %vm481_vm1, %v741_v35 }
 0x391   : > { %v740_v37 = vpop.xlane.xlu1 %739 }
 0x392   : > { %v742_v38 = vadd.f32 %v740_v37, %v734_v36 }
 0x394   : > { %745 = vst.msk [vmem:[#allocation4 + $0x8] sm:$0xff] %vm481_vm1, %v742_v38 }
 0x395   : > { %v751_v49 = vpop.permute.xlu0 %750  ;;  %v756_v50 = vpop.permute.xlu1 %755 }
 0x396   : > { %v759_v52 = vmul.f32 0.0, %v756_v50  ;;  %v758_v53 = vmul.f32 0.0, %v751_v49 }
 0x397   : > { %v816_v39 = vld [vmem:[#allocation4] sm:$0xff] }
 0x398   : > { %1236 = vrcp.f32 %v816_v39 }
 0x39b   : > { %v817_v40 = vld [vmem:[#allocation4 + $0x8] sm:$0xff] }
 0x39c   : > { %1238 = vrcp.f32 %v817_v40 }
 0x3a2   : > { %v1237_v41 = vpop.eup %1236 }
 0x3a3   : > { %822 = vperm.xlu0 %1185, %v1237_v41  }
 0x3a6   : > { %v1239_v43 = vpop.eup %1238 }
 0x3a7   : > { %827 = vperm.xlu0 %1185, %v1239_v43  }
 0x3d8   : > { %v798_v45 = vpop.f32.mrb[8].mxu1 }
 0x3d9   : > { %v1133_v46 = vpop.f32.mrb[9].mxu1  ;;  %v805_v54 = vadd.f32 %v798_v45, %v758_v53 }
 0x3da   : > { %v801_v47 = vpop.f32.mrb[10].mxu1 }
 0x3db   : > { %v1134_v48 = vpop.f32.mrb[11].mxu1  ;;  %v806_v55 = vadd.f32 %v801_v47, %v759_v52 }
 0x422   : > { %v823_v51 = vpop.permute.xlu0 %822 }
 0x423   : > { %v830_v56 = vmul.f32 %v823_v51, %v805_v54 }
 0x426   : > { %v828_v2 = vpop.permute.xlu0 %827 }
 0x427   : > { %v831_v57 = vmul.f32 %v828_v2, %v806_v55 }
 0x429   : > { %v832_v58 = vpack.c.bf16 %v831_v57, %v830_v56 }
 0x42b   : > { %1152 = vmatmul.mubr.bf16.vlgmr.msra.gmra.mrb[4].mxu0 %v832_v58 }
 0x4fe   : > { %v938_v60 = vpop.f32.mrb[4].mxu0 }
 0x4ff   : > { %v939_v61 = vadd.f32 %v1067_v59, %v938_v60  ;;  %v1153_v62 = vpop.f32.mrb[5].mxu0 }
 0x500   : > { %v941_v63 = vpop.f32.mrb[6].mxu0 }
 0x501   : > { %945 = vst [vmem:[%s353_s18] sm:$0xff] %v939_v61  ;;  %v942_v0 = vadd.f32 %v1067_v59, %v941_v63  ;;  %v1154_v1 = vpop.f32.mrb[7].mxu0 }
 0x503   : > { %946 = vst [vmem:[%s353_s18 + $0x8] sm:$0xff] %v942_v0 }
 0x504 PF: > { %s18_s29 = sadd.s32 1, %s1262_s29   ;;  %s1513_s27 = smov %s1258_s28 }
 0x505   : > { %p15_p5 = scmp.ge.s32.totalorder %s18_s29, 4   ;;  %s1514_s28 = smov %s1516_s30 }
 0x507   :  { %17 = sbr.rel (!%p15_p5) target bundleno = 2 (0x2), region = 93 }

</bundles_post_ra>
